<compile_context>
chip_gen: v6e
topology: v6e:2x2x1
jax: 0.10.0
libtpu: 0.0.40
codegen_flags: <defaults>
</compile_context>

<pallas_src>
import numpy as np

import jax
import jax.numpy as jnp
from jax.experimental import pallas as pl
from jax.experimental.pallas import tpu as pltpu


# ----------------------------------------------------------------------------
# Elementwise helpers (f32 on VPU; sigmoid's divide rides the EUP via approx vrcp)
# ----------------------------------------------------------------------------
def _leaky_relu(x):
    return jnp.where(x >= 0.0, x, 0.2 * x)


def _swish(x):
    return x * pl.reciprocal(1.0 + jnp.exp(-x), approx=True)


# ----------------------------------------------------------------------------
# Precomputed ortho-DFT Kronecker matrices (numpy, done once at init)
# ----------------------------------------------------------------------------
def make_dft_mats(H, W):
    """Real matrices implementing rfft2 / irfft2 (norm='ortho') as plain matmuls.

    Forward:  Gr = Mr @ t,  Gi = Mi @ t   with t laid out (h*W + w, channel)
              and G laid out (g*Wf + f, channel),  Wf = W//2 + 1.
    Inverse:  y  = Nr @ Vr + Ni @ Vi      (torch irfftn halfcomplex convention).
    """
    assert W % 2 == 0, "even width assumed (Nyquist handling)"
    Wf = W // 2 + 1
    h = np.arange(H)
    w = np.arange(W)
    f = np.arange(Wf)

    eH = np.exp(-2j * np.pi * np.outer(h, h) / H) / np.sqrt(H)          # [g, h]
    eW = np.exp(-2j * np.pi * np.outer(w, f) / W) / np.sqrt(W)          # [w, f]
    M = np.einsum("gh,wf->gfhw", eH, eW).reshape(H * Wf, H * W)         # [(g,f), (h,w)]

    eHi = np.exp(+2j * np.pi * np.outer(h, h) / H) / np.sqrt(H)         # [h, g]
    m = np.ones(Wf)
    m[1:W // 2] = 2.0                                                   # mirrored bins count twice
    cw = m[:, None] * np.cos(2 * np.pi * np.outer(f, w) / W) / np.sqrt(W)   # [f, w]
    sw = m[:, None] * np.sin(2 * np.pi * np.outer(f, w) / W) / np.sqrt(W)   # [f, w]
    Nc = np.einsum("hg,fw->hwgf", eHi, cw + 1j * sw).reshape(H * W, H * Wf)  # [(h,w), (g,f)]

    return (
        np.ascontiguousarray(M.real).astype(np.float32),
        np.ascontiguousarray(M.imag).astype(np.float32),
        np.ascontiguousarray(Nc.real).astype(np.float32),
        np.ascontiguousarray(-Nc.imag).astype(np.float32),
    )


# ----------------------------------------------------------------------------
# Fused Pallas kernel: daconv -> FourierUnit -> conv2, all VMEM-resident.
# Layout: channels on sublanes, pixels (H*W) on lanes (NCHW-native, no transposes).
# ----------------------------------------------------------------------------
def _spectral_daconv_kernel(
    x_ref, w1t_ref, b1_ref, w2t_ref, b2_ref,
    mrt_ref, mit_ref, nrt_ref, nit_ref, w3t_ref, b3_ref,
    o_ref, t_scr,
):
    f32 = jnp.float32
    bf16 = jnp.bfloat16

    xT = x_ref[0].astype(bf16)                                          # (C, HW)

    # --- daconv: 1x1 conv -> LeakyReLU(0.2) -> Swish (bf16 MXU, f32 accum/bias) ---
    t_pre = jnp.dot(w1t_ref[...], xT, preferred_element_type=f32) + b1_ref[...]
    tT = _swish(_leaky_relu(t_pre))                                     # (Ch, HW) f32
    tT_b = tT.astype(bf16)
    t_scr[...] = tT_b                 # stash daconv output; ends its vreg live range

    # --- FourierUnit: rfft2 (ortho) as dense DFT matmuls ---
    grT = jnp.dot(tT_b, mrt_ref[...], preferred_element_type=f32)       # (Ch, HWf)
    giT = jnp.dot(tT_b, mit_ref[...], preferred_element_type=f32)       # (Ch, HWf)
    g = jnp.concatenate([grT, giT], axis=0).astype(bf16)                # (2Ch, HWf), free concat

    # 1x1 conv over the 2*Ch real/imag channels, Swish then LeakyReLU — one matmul,
    # one bias add, one activation pass (real/imag blocks stacked on sublanes).
    v = jnp.dot(w2t_ref[...], g, preferred_element_type=f32) + b2_ref[...]
    v = _leaky_relu(_swish(v)).astype(bf16)                             # (2Ch, HWf)
    Ch = v.shape[0] // 2

    # irfft2 (ortho, torch halfcomplex convention) as dense matmuls
    fuT = (jnp.dot(v[:Ch], nrt_ref[...], preferred_element_type=f32)
           + jnp.dot(v[Ch:], nit_ref[...], preferred_element_type=f32)) # (Ch, HW) f32

    # --- conv2 on (daconv output + FourierUnit output) ---
    z = (t_scr[...].astype(f32) + fuT).astype(bf16)
    out = jnp.dot(w3t_ref[...], z, preferred_element_type=f32) + b3_ref[...]
    o_ref[0] = out.astype(o_ref.dtype)                                  # (C, HW), lane-dense


def spectral_transform_daconv_pallas(x_nchw, kp):
    """x_nchw: (B, C, H, W) float32.  kp: dict from prepare_inputs().  Returns NCHW f32."""
    B, C, H, W = x_nchw.shape
    Ch = C // 2
    HW = H * W
    Wf = W // 2 + 1
    HWf = H * Wf

    # Free view: NCHW -> (B, C, H*W). No HBM transpose in or out.
    x_t = x_nchw.reshape(B, C, HW)

    full = lambda b: (0, 0)
    flops = 2 * B * (Ch * C * HW            # daconv
                     + 2 * Ch * HW * HWf    # forward DFT (re + im)
                     + (2 * Ch) * (2 * Ch) * HWf   # FU conv
                     + 2 * Ch * HWf * HW    # inverse DFT (re + im)
                     + C * Ch * HW)         # conv2
    transcendentals = B * (Ch * HW + 2 * Ch * HWf)
    bytes_accessed = int(x_t.size * x_t.dtype.itemsize + B * C * HW * 4
                         + sum(int(np.prod(v.shape)) * v.dtype.itemsize
                               for v in kp.values()))

    out_t = pl.pallas_call(
        _spectral_daconv_kernel,
        out_shape=jax.ShapeDtypeStruct((B, C, HW), jnp.float32),
        grid=(B,),
        in_specs=[
            pl.BlockSpec((1, C, HW), lambda b: (b, 0, 0)),   # x   (C on sublanes, HW on lanes)
            pl.BlockSpec((Ch, C), full),                     # w1^T
            pl.BlockSpec((Ch, 1), full),                     # b1  (column, f32)
            pl.BlockSpec((2 * Ch, 2 * Ch), full),            # w2^T (block real/imag order)
            pl.BlockSpec((2 * Ch, 1), full),                 # b2  (column, f32)
            pl.BlockSpec((HW, HWf), full),                   # Mr^T (forward DFT, real)
            pl.BlockSpec((HW, HWf), full),                   # Mi^T (forward DFT, imag)
            pl.BlockSpec((HWf, HW), full),                   # Nr^T (inverse DFT, real coeff)
            pl.BlockSpec((HWf, HW), full),                   # Ni^T (inverse DFT, imag coeff)
            pl.BlockSpec((C, Ch), full),                     # w3^T
            pl.BlockSpec((C, 1), full),                      # b3  (column, f32)
        ],
        out_specs=pl.BlockSpec((1, C, HW), lambda b: (b, 0, 0)),
        scratch_shapes=[pltpu.VMEM((Ch, HW), jnp.bfloat16)],  # daconv output stash
        compiler_params=pltpu.CompilerParams(
            dimension_semantics=("parallel",),               # batches -> both TCs on v7x
            vmem_limit_bytes=64 * 1024 * 1024),
        cost_estimate=pl.CostEstimate(
            flops=flops, transcendentals=transcendentals, bytes_accessed=bytes_accessed),
    )(x_t, kp["w1t"], kp["b1"], kp["w2t"], kp["b2"],
      kp["mrt"], kp["mit"], kp["nrt"], kp["nit"], kp["w3t"], kp["b3"])

    return out_t.reshape(B, C, H, W)


# ----------------------------------------------------------------------------
# Parameters (PyTorch conventions) and one-time kernel-input preparation
# ----------------------------------------------------------------------------
def init_params(key, embed_dim):
    """Weights stored as (in, out); FU conv (w2/b2) uses the PyTorch interleaved
    [r0, i0, r1, i1, ...] channel ordering on both its input and output axes."""
    C = embed_dim
    Ch = C // 2
    ks = jax.random.split(key, 6)
    s = 0.05
    f32 = jnp.float32
    return {
        "w1": jax.random.normal(ks[0], (C, Ch), f32) * s,
        "b1": jax.random.normal(ks[1], (Ch,), f32) * s,
        "w2": jax.random.normal(ks[2], (2 * Ch, 2 * Ch), f32) * s,
        "b2": jax.random.normal(ks[3], (2 * Ch,), f32) * s,
        "w3": jax.random.normal(ks[4], (Ch, C), f32) * s,
        "b3": jax.random.normal(ks[5], (C,), f32) * s,
    }


def prepare_inputs(params, H, W, compute_dtype=jnp.bfloat16):
    """Hoisted preprocessing (once, outside the forward path):
      * permute the FU conv weight from interleaved (PyTorch) channel order to
        [real-block | imag-block] order,
      * pre-transpose every weight / DFT matrix for the channels-on-sublanes layout,
      * cast matmul operands to bf16 (f32 accumulation happens in-kernel),
      * keep biases in f32 as column vectors."""
    C = params["w1"].shape[0]
    assert C % 2 == 0
    Ch = C // 2

    perm = np.concatenate([np.arange(Ch) * 2, np.arange(Ch) * 2 + 1])   # block -> interleaved idx
    w2 = np.asarray(params["w2"])
    b2 = np.asarray(params["b2"])
    w2c = w2[perm][:, perm]        # (2Ch_in, 2Ch_out), block real/imag order on both axes
    b2c = b2[perm]

    m_r, m_i, n_r, n_i = make_dft_mats(H, W)
    cd = compute_dtype
    f32 = jnp.float32

    return {
        "w1t": jnp.asarray(np.asarray(params["w1"]).T, cd),    # (Ch, C)
        "b1":  jnp.asarray(np.asarray(params["b1"]).reshape(-1, 1), f32),
        "w2t": jnp.asarray(w2c.T, cd),                         # (2Ch, 2Ch)
        "b2":  jnp.asarray(b2c.reshape(-1, 1), f32),
        "w3t": jnp.asarray(np.asarray(params["w3"]).T, cd),    # (C, Ch)
        "b3":  jnp.asarray(np.asarray(params["b3"]).reshape(-1, 1), f32),
        "mrt": jnp.asarray(m_r.T, cd),                         # (HW, HWf)
        "mit": jnp.asarray(m_i.T, cd),
        "nrt": jnp.asarray(n_r.T, cd),                         # (HWf, HW)
        "nit": jnp.asarray(n_i.T, cd),
    }


# ----------------------------------------------------------------------------
# Independent float64 numpy reference (mirrors the PyTorch forward exactly)
# ----------------------------------------------------------------------------
def reference_forward_numpy(x, params, H, W):
    x = np.asarray(x, np.float64)
    B, C, _, _ = x.shape
    Ch = C // 2
    Wf = W // 2 + 1
    w1 = np.asarray(params["w1"], np.float64); b1 = np.asarray(params["b1"], np.float64)
    w2 = np.asarray(params["w2"], np.float64); b2 = np.asarray(params["b2"], np.float64)
    w3 = np.asarray(params["w3"], np.float64); b3 = np.asarray(params["b3"], np.float64)

    def lrelu(v):
        return np.where(v >= 0.0, v, 0.2 * v)

    def swish(v):
        return v / (1.0 + np.exp(-v))

    # daconv: 1x1 conv -> LeakyReLU(0.2) -> Swish
    t = np.einsum("bchw,cd->bdhw", x, w1) + b1[None, :, None, None]
    t = swish(lrelu(t))

    # FourierUnit
    ff = np.fft.rfft2(t, axes=(-2, -1), norm="ortho")                       # (B, Ch, H, Wf)
    u = np.stack([ff.real, ff.imag], axis=2).reshape(B, 2 * Ch, H, Wf)       # interleaved r/i channels
    v = np.einsum("bchw,cd->bdhw", u, w2) + b2[None, :, None, None]
    v = lrelu(swish(v))
    v = v.reshape(B, Ch, 2, H, Wf)
    vc = v[:, :, 0] + 1j * v[:, :, 1]
    # torch irfftn convention: complex ifft along H, then C2R along W.
    f2 = np.fft.ifft(vc, axis=-2, norm="ortho")
    full = np.concatenate([f2, np.conj(f2[..., W // 2 - 1:0:-1])], axis=-1)
    fu = np.real(np.fft.ifft(full, axis=-1, norm="ortho"))

    # conv2 on (daconv output + FourierUnit output)
    out = np.einsum("bchw,cd->bdhw", t + fu, w3) + b3[None, :, None, None]
    return out


# ----------------------------------------------------------------------------
# Main
# ----------------------------------------------------------------------------
if __name__ == "__main__":
    B, C, H, W = 2, 128, 16, 16        # embed_dim=128: C=128 sublanes, H*W=256 lanes

    key = jax.random.PRNGKey(0)
    kx, kparam = jax.random.split(key)
    x = jax.random.normal(kx, (B, C, H, W), jnp.float32)
    params = init_params(kparam, C)

    kernel_inputs = prepare_inputs(params, H, W)      # DFT matrices + weight permutation, once

    fwd = jax.jit(spectral_transform_daconv_pallas)
    out = jax.block_until_ready(fwd(x, kernel_inputs))

    ref = reference_forward_numpy(np.asarray(x),
                                  {k: np.asarray(v) for k, v in params.items()}, H, W)
    np.testing.assert_allclose(np.asarray(out), ref, rtol=2e-2, atol=2e-2)

    print("KERNEL_OK")
</pallas_src>

<mosaic_0001>
module attributes {stable_mosaic.version = 11 : i64} {
  func.func @_spectral_daconv_kernel(%arg0: i32, %arg1: memref<1x128x256xf32, #tpu.memory_space<vmem>>, %arg2: memref<64x128xbf16, #tpu.memory_space<vmem>>, %arg3: memref<64x1xf32, #tpu.memory_space<vmem>>, %arg4: memref<128x128xbf16, #tpu.memory_space<vmem>>, %arg5: memref<128x1xf32, #tpu.memory_space<vmem>>, %arg6: memref<256x144xbf16, #tpu.memory_space<vmem>>, %arg7: memref<256x144xbf16, #tpu.memory_space<vmem>>, %arg8: memref<144x256xbf16, #tpu.memory_space<vmem>>, %arg9: memref<144x256xbf16, #tpu.memory_space<vmem>>, %arg10: memref<128x64xbf16, #tpu.memory_space<vmem>>, %arg11: memref<128x1xf32, #tpu.memory_space<vmem>>, %arg12: memref<1x128x256xf32, #tpu.memory_space<vmem>>, %arg13: memref<64x256xbf16, #tpu.memory_space<vmem>>) attributes {dimension_semantics = [#tpu.dimension_semantics<parallel>], iteration_bounds = array<i64: 2>, scalar_prefetch = 0 : i64, scratch_operands = 1 : i64, tpu.core_type = #tpu.core_type<tc>, window_params = [{transform_indices = @transform_0, window_bounds = array<i64: 1, 128, 256>}, {pipeline_mode = #tpu.pipeline_mode<synchronous>, transform_indices = @transform_1, window_bounds = array<i64: 64, 128>}, {pipeline_mode = #tpu.pipeline_mode<synchronous>, transform_indices = @transform_2, window_bounds = array<i64: 64, 1>}, {pipeline_mode = #tpu.pipeline_mode<synchronous>, transform_indices = @transform_3, window_bounds = array<i64: 128, 128>}, {pipeline_mode = #tpu.pipeline_mode<synchronous>, transform_indices = @transform_4, window_bounds = array<i64: 128, 1>}, {pipeline_mode = #tpu.pipeline_mode<synchronous>, transform_indices = @transform_5, window_bounds = array<i64: 256, 144>}, {pipeline_mode = #tpu.pipeline_mode<synchronous>, transform_indices = @transform_6, window_bounds = array<i64: 256, 144>}, {pipeline_mode = #tpu.pipeline_mode<synchronous>, transform_indices = @transform_7, window_bounds = array<i64: 144, 256>}, {pipeline_mode = #tpu.pipeline_mode<synchronous>, transform_indices = @transform_8, window_bounds = array<i64: 144, 256>}, {pipeline_mode = #tpu.pipeline_mode<synchronous>, transform_indices = @transform_9, window_bounds = array<i64: 128, 64>}, {pipeline_mode = #tpu.pipeline_mode<synchronous>, transform_indices = @transform_10, window_bounds = array<i64: 128, 1>}, {transform_indices = @transform_11, window_bounds = array<i64: 1, 128, 256>}]} {
    %c0 = arith.constant 0 : index
    %c0_0 = arith.constant 0 : index
    %c0_1 = arith.constant 0 : index
    %0 = vector.load %arg1[%c0, %c0_0, %c0_1] : memref<1x128x256xf32, #tpu.memory_space<vmem>>, vector<1x128x256xf32>
    %1 = vector.shape_cast %0 : vector<1x128x256xf32> to vector<128x256xf32>
    %2 = arith.truncf %1 : vector<128x256xf32> to vector<128x256xbf16>
    %c0_2 = arith.constant 0 : index
    %c0_3 = arith.constant 0 : index
    %3 = vector.load %arg2[%c0_2, %c0_3] : memref<64x128xbf16, #tpu.memory_space<vmem>>, vector<64x128xbf16>
    %cst = arith.constant dense<0.000000e+00> : vector<64x256xf32>
    %4 = tpu.matmul %3, %2, %cst {dimension_numbers = #tpu.dot_dimension_numbers<[1], [0], [0], [1], [0, 0, 1, 1], [], []>} : vector<64x128xbf16>, vector<128x256xbf16>, vector<64x256xf32> -> vector<64x256xf32>
    %c0_4 = arith.constant 0 : index
    %c0_5 = arith.constant 0 : index
    %5 = vector.load %arg3[%c0_4, %c0_5] : memref<64x1xf32, #tpu.memory_space<vmem>>, vector<64x1xf32>
    %6 = vector.broadcast %5 : vector<64x1xf32> to vector<64x256xf32>
    %7 = arith.addf %4, %6 : vector<64x256xf32>
    %cst_6 = arith.constant 0.000000e+00 : f32
    %8 = vector.broadcast %cst_6 : f32 to vector<64x256xf32>
    %9 = arith.cmpf oge, %7, %8 : vector<64x256xf32>
    %cst_7 = arith.constant 2.000000e-01 : f32
    %10 = vector.broadcast %cst_7 : f32 to vector<64x256xf32>
    %11 = arith.mulf %10, %7 : vector<64x256xf32>
    %12 = arith.select %9, %7, %11 : vector<64x256xi1>, vector<64x256xf32>
    %cst_8 = arith.constant 0.000000e+00 : f32
    %13 = vector.broadcast %cst_8 : f32 to vector<64x256xf32>
    %14 = arith.subf %13, %12 : vector<64x256xf32>
    %15 = math.exp %14 : vector<64x256xf32>
    %cst_9 = arith.constant 1.000000e+00 : f32
    %16 = vector.broadcast %cst_9 : f32 to vector<64x256xf32>
    %17 = arith.addf %16, %15 : vector<64x256xf32>
    %18 = tpu.reciprocal %17 {approx = true} : vector<64x256xf32> -> vector<64x256xf32>
    %19 = arith.mulf %12, %18 : vector<64x256xf32>
    %20 = arith.truncf %19 : vector<64x256xf32> to vector<64x256xbf16>
    %c0_10 = arith.constant 0 : index
    %c0_11 = arith.constant 0 : index
    %21 = vector.load %arg13[%c0_10, %c0_11] : memref<64x256xbf16, #tpu.memory_space<vmem>>, vector<64x256xbf16>
    tpu.vector_store %arg13[%c0_10, %c0_11], %20 {strides = array<i32>} : memref<64x256xbf16, #tpu.memory_space<vmem>>, vector<64x256xbf16>,
    %c0_12 = arith.constant 0 : index
    %c0_13 = arith.constant 0 : index
    %22 = vector.load %arg6[%c0_12, %c0_13] : memref<256x144xbf16, #tpu.memory_space<vmem>>, vector<256x144xbf16>
    %cst_14 = arith.constant dense<0.000000e+00> : vector<64x144xf32>
    %23 = tpu.matmul %20, %22, %cst_14 {dimension_numbers = #tpu.dot_dimension_numbers<[1], [0], [0], [1], [0, 0, 1, 1], [], []>} : vector<64x256xbf16>, vector<256x144xbf16>, vector<64x144xf32> -> vector<64x144xf32>
    %c0_15 = arith.constant 0 : index
    %c0_16 = arith.constant 0 : index
    %24 = vector.load %arg7[%c0_15, %c0_16] : memref<256x144xbf16, #tpu.memory_space<vmem>>, vector<256x144xbf16>
    %cst_17 = arith.constant dense<0.000000e+00> : vector<64x144xf32>
    %25 = tpu.matmul %20, %24, %cst_17 {dimension_numbers = #tpu.dot_dimension_numbers<[1], [0], [0], [1], [0, 0, 1, 1], [], []>} : vector<64x256xbf16>, vector<256x144xbf16>, vector<64x144xf32> -> vector<64x144xf32>
    %26 = tpu.concatenate %23, %25 in 0 : vector<64x144xf32>, vector<64x144xf32> -> vector<128x144xf32>
    %27 = arith.truncf %26 : vector<128x144xf32> to vector<128x144xbf16>
    %c0_18 = arith.constant 0 : index
    %c0_19 = arith.constant 0 : index
    %28 = vector.load %arg4[%c0_18, %c0_19] : memref<128x128xbf16, #tpu.memory_space<vmem>>, vector<128x128xbf16>
    %cst_20 = arith.constant dense<0.000000e+00> : vector<128x144xf32>
    %29 = tpu.matmul %28, %27, %cst_20 {dimension_numbers = #tpu.dot_dimension_numbers<[1], [0], [0], [1], [0, 0, 1, 1], [], []>} : vector<128x128xbf16>, vector<128x144xbf16>, vector<128x144xf32> -> vector<128x144xf32>
    %c0_21 = arith.constant 0 : index
    %c0_22 = arith.constant 0 : index
    %30 = vector.load %arg5[%c0_21, %c0_22] : memref<128x1xf32, #tpu.memory_space<vmem>>, vector<128x1xf32>
    %31 = vector.broadcast %30 : vector<128x1xf32> to vector<128x144xf32>
    %32 = arith.addf %29, %31 : vector<128x144xf32>
    %cst_23 = arith.constant 0.000000e+00 : f32
    %33 = vector.broadcast %cst_23 : f32 to vector<128x144xf32>
    %34 = arith.subf %33, %32 : vector<128x144xf32>
    %35 = math.exp %34 : vector<128x144xf32>
    %cst_24 = arith.constant 1.000000e+00 : f32
    %36 = vector.broadcast %cst_24 : f32 to vector<128x144xf32>
    %37 = arith.addf %36, %35 : vector<128x144xf32>
    %38 = tpu.reciprocal %37 {approx = true} : vector<128x144xf32> -> vector<128x144xf32>
    %39 = arith.mulf %32, %38 : vector<128x144xf32>
    %cst_25 = arith.constant 0.000000e+00 : f32
    %40 = vector.broadcast %cst_25 : f32 to vector<128x144xf32>
    %41 = arith.cmpf oge, %39, %40 : vector<128x144xf32>
    %cst_26 = arith.constant 2.000000e-01 : f32
    %42 = vector.broadcast %cst_26 : f32 to vector<128x144xf32>
    %43 = arith.mulf %42, %39 : vector<128x144xf32>
    %44 = arith.select %41, %39, %43 : vector<128x144xi1>, vector<128x144xf32>
    %45 = arith.truncf %44 : vector<128x144xf32> to vector<128x144xbf16>
    %46 = vector.extract_strided_slice %45 {offsets = [0, 0], sizes = [64, 144], strides = [1, 1]} : vector<128x144xbf16> to vector<64x144xbf16>
    %c0_27 = arith.constant 0 : index
    %c0_28 = arith.constant 0 : index
    %47 = vector.load %arg8[%c0_27, %c0_28] : memref<144x256xbf16, #tpu.memory_space<vmem>>, vector<144x256xbf16>
    %cst_29 = arith.constant dense<0.000000e+00> : vector<64x256xf32>
    %48 = tpu.matmul %46, %47, %cst_29 {dimension_numbers = #tpu.dot_dimension_numbers<[1], [0], [0], [1], [0, 0, 1, 1], [], []>} : vector<64x144xbf16>, vector<144x256xbf16>, vector<64x256xf32> -> vector<64x256xf32>
    %49 = vector.extract_strided_slice %45 {offsets = [64, 0], sizes = [64, 144], strides = [1, 1]} : vector<128x144xbf16> to vector<64x144xbf16>
    %c0_30 = arith.constant 0 : index
    %c0_31 = arith.constant 0 : index
    %50 = vector.load %arg9[%c0_30, %c0_31] : memref<144x256xbf16, #tpu.memory_space<vmem>>, vector<144x256xbf16>
    %cst_32 = arith.constant dense<0.000000e+00> : vector<64x256xf32>
    %51 = tpu.matmul %49, %50, %cst_32 {dimension_numbers = #tpu.dot_dimension_numbers<[1], [0], [0], [1], [0, 0, 1, 1], [], []>} : vector<64x144xbf16>, vector<144x256xbf16>, vector<64x256xf32> -> vector<64x256xf32>
    %52 = arith.addf %48, %51 : vector<64x256xf32>
    %c0_33 = arith.constant 0 : index
    %c0_34 = arith.constant 0 : index
    %53 = vector.load %arg13[%c0_33, %c0_34] : memref<64x256xbf16, #tpu.memory_space<vmem>>, vector<64x256xbf16>
    %54 = arith.extf %53 : vector<64x256xbf16> to vector<64x256xf32>
    %55 = arith.addf %54, %52 : vector<64x256xf32>
    %56 = arith.truncf %55 : vector<64x256xf32> to vector<64x256xbf16>
    %c0_35 = arith.constant 0 : index
    %c0_36 = arith.constant 0 : index
    %57 = vector.load %arg10[%c0_35, %c0_36] : memref<128x64xbf16, #tpu.memory_space<vmem>>, vector<128x64xbf16>
    %cst_37 = arith.constant dense<0.000000e+00> : vector<128x256xf32>
    %58 = tpu.matmul %57, %56, %cst_37 {dimension_numbers = #tpu.dot_dimension_numbers<[1], [0], [0], [1], [0, 0, 1, 1], [], []>} : vector<128x64xbf16>, vector<64x256xbf16>, vector<128x256xf32> -> vector<128x256xf32>
    %c0_38 = arith.constant 0 : index
    %c0_39 = arith.constant 0 : index
    %59 = vector.load %arg11[%c0_38, %c0_39] : memref<128x1xf32, #tpu.memory_space<vmem>>, vector<128x1xf32>
    %60 = vector.broadcast %59 : vector<128x1xf32> to vector<128x256xf32>
    %61 = arith.addf %58, %60 : vector<128x256xf32>
    %c0_40 = arith.constant 0 : index
    %c0_41 = arith.constant 0 : index
    %c0_42 = arith.constant 0 : index
    %62 = vector.load %arg12[%c0_40, %c0_41, %c0_42] : memref<1x128x256xf32, #tpu.memory_space<vmem>>, vector<1x128x256xf32>
    %63 = vector.shape_cast %62 : vector<1x128x256xf32> to vector<128x256xf32>
    %64 = vector.shape_cast %61 : vector<128x256xf32> to vector<1x128x256xf32>
    tpu.vector_store %arg12[%c0_40, %c0_41, %c0_42], %64 {strides = array<i32>} : memref<1x128x256xf32, #tpu.memory_space<vmem>>, vector<1x128x256xf32>,
    return
  }
  func.func @transform_0(%arg0: i32) -> (i32, i32, i32) {
    %c0_i32 = arith.constant 0 : i32
    %c0_i32_0 = arith.constant 0 : i32
    %c0_i32_1 = arith.constant 0 : i32
    return %arg0, %c0_i32, %c0_i32_0 : i32, i32, i32
  }
  func.func @transform_1(%arg0: i32) -> (i32, i32) {
    %c0_i32 = arith.constant 0 : i32
    %c0_i32_0 = arith.constant 0 : i32
    %c0_i32_1 = arith.constant 0 : i32
    return %c0_i32, %c0_i32_0 : i32, i32
  }
  func.func @transform_2(%arg0: i32) -> (i32, i32) {
    %c0_i32 = arith.constant 0 : i32
    %c0_i32_0 = arith.constant 0 : i32
    %c0_i32_1 = arith.constant 0 : i32
    return %c0_i32, %c0_i32_0 : i32, i32
  }
  func.func @transform_3(%arg0: i32) -> (i32, i32) {
    %c0_i32 = arith.constant 0 : i32
    %c0_i32_0 = arith.constant 0 : i32
    %c0_i32_1 = arith.constant 0 : i32
    return %c0_i32, %c0_i32_0 : i32, i32
  }
  func.func @transform_4(%arg0: i32) -> (i32, i32) {
    %c0_i32 = arith.constant 0 : i32
    %c0_i32_0 = arith.constant 0 : i32
    %c0_i32_1 = arith.constant 0 : i32
    return %c0_i32, %c0_i32_0 : i32, i32
  }
  func.func @transform_5(%arg0: i32) -> (i32, i32) {
    %c0_i32 = arith.constant 0 : i32
    %c0_i32_0 = arith.constant 0 : i32
    %c0_i32_1 = arith.constant 0 : i32
    return %c0_i32, %c0_i32_0 : i32, i32
  }
  func.func @transform_6(%arg0: i32) -> (i32, i32) {
    %c0_i32 = arith.constant 0 : i32
    %c0_i32_0 = arith.constant 0 : i32
    %c0_i32_1 = arith.constant 0 : i32
    return %c0_i32, %c0_i32_0 : i32, i32
  }
  func.func @transform_7(%arg0: i32) -> (i32, i32) {
    %c0_i32 = arith.constant 0 : i32
    %c0_i32_0 = arith.constant 0 : i32
    %c0_i32_1 = arith.constant 0 : i32
    return %c0_i32, %c0_i32_0 : i32, i32
  }
  func.func @transform_8(%arg0: i32) -> (i32, i32) {
    %c0_i32 = arith.constant 0 : i32
    %c0_i32_0 = arith.constant 0 : i32
    %c0_i32_1 = arith.constant 0 : i32
    return %c0_i32, %c0_i32_0 : i32, i32
  }
  func.func @transform_9(%arg0: i32) -> (i32, i32) {
    %c0_i32 = arith.constant 0 : i32
    %c0_i32_0 = arith.constant 0 : i32
    %c0_i32_1 = arith.constant 0 : i32
    return %c0_i32, %c0_i32_0 : i32, i32
  }
  func.func @transform_10(%arg0: i32) -> (i32, i32) {
    %c0_i32 = arith.constant 0 : i32
    %c0_i32_0 = arith.constant 0 : i32
    %c0_i32_1 = arith.constant 0 : i32
    return %c0_i32, %c0_i32_0 : i32, i32
  }
  func.func @transform_11(%arg0: i32) -> (i32, i32, i32) {
    %c0_i32 = arith.constant 0 : i32
    %c0_i32_0 = arith.constant 0 : i32
    %c0_i32_1 = arith.constant 0 : i32
    return %arg0, %c0_i32, %c0_i32_0 : i32, i32, i32
  }
}

</mosaic_0001>

<bundles_post_ra>
// kernel: spectral_transform_daconv_pallas.1
= control target key start
LH: loop header
LB: loop body
LE: loop exit
PB: predicated region body
PF: predicated region fallthrough
CT: control target
= control target key end

     0   :  { %s3339_s17 = smov 0   ;;  %s4293_s0 = inlined_call_operand.vmem [shape: f32[2,128,256], index: 0, kind: input, shape index: {}]   ;;  %s4294_s1 = inlined_call_operand.vmem [shape: bf16[64,128], index: 1, kind: input, shape index: {}]   ;;  %s4295_s2 = inlined_call_operand.vmem [shape: f32[64,1], index: 2, kind: input, shape index: {}]   ;;  %s4296_s3 = inlined_call_operand.vmem [shape: bf16[128,128], index: 3, kind: input, shape index: {}]   ;;  %s4297_s4 = inlined_call_operand.vmem [shape: f32[128,1], index: 4, kind: input, shape index: {}]   ;;  %s4298_s5 = inlined_call_operand.vmem [shape: bf16[256,144], index: 5, kind: input, shape index: {}]   ;;  %s4299_s6 = inlined_call_operand.vmem [shape: bf16[256,144], index: 6, kind: input, shape index: {}]   ;;  %s4300_s7 = inlined_call_operand.vmem [shape: bf16[144,256], index: 7, kind: input, shape index: {}]   ;;  %s4301_s8 = inlined_call_operand.vmem [shape: bf16[144,256], index: 8, kind: input, shape index: {}]   ;;  %s4302_s9 = inlined_call_operand.vmem [shape: bf16[128,64], index: 9, kind: input, shape index: {}]   ;;  %s4303_s10 = inlined_call_operand.vmem [shape: f32[128,1], index: 10, kind: input, shape index: {}]   ;;  %s4304_s11 = inlined_call_operand.vmem [shape: f32[2,128,256], index: 11, kind: output, shape index: {}]  }
   0x1 LB: > { %s2724_s18 = sadd.s32 4294967295, %s3276_s17   ;;  %p2728_p0 = scmp.ge.s32.totalorder %s3276_s17, 1  ;;  %s3276_s17 = sphi %s3339_s17, %s21_s17  }
   0x2   : > { %p337_p1 = scmp.lt.s32.totalorder %s3276_s17, 3 }
   0x4   : > { %p338_p2 = pnand %p2728_p0, %p337_p1 }
   0x5   : > { %p377_p3 = scmp.lt.s32.totalorder (!%p338_p2), %s2724_s18, 1 }
   0x6   : > { %341 = sbr.rel (%p338_p2) target bundleno = 1325 (0x52d), region = 64 }
   0xb   : > { %v444_v0 = vld [vmem:[%s4295_s2] sm:$0xff]  ;;  %v3278_v1 = vmov 0   ;;  %v446_v2 = vld [vmem:[%s4295_s2 + $0x10] sm:$0xff]  ;;  %s4306_s18 = smov (!%p377_p3, %s2724_s18), 1  ;;  %v445_v3 = vld [vmem:[%s4295_s2 + $0x8] sm:$0xff] }
   0xc   : > { %2906 = vset.pattern.permute.xlu0 %v3278_v1  ;;  %548 = vmatprep.mubr.bf16.mxu0 %v3278_v1  ;;  %s2879_s25 = sshll.u32 %s4306_s18, 8  ;;  %v447_v4 = vld [vmem:[%s4295_s2 + $0x18] sm:$0xff]  ;;  %v448_v5 = vld [vmem:[%s4295_s2 + $0x20] sm:$0xff]  ;;  %v449_v9 = vld [vmem:[%s4295_s2 + $0x28] sm:$0xff] }
   0xd   : > { %454 = vperm.xlu0 %2906, %v444_v0   ;;  %2907 = vset.pattern.permute.xlu1 %v3278_v1  ;;  %s3370_s30 = scalar_lea.vmem %s4293_s0, %s2879_s25  ;;  %v450_v24 = vld [vmem:[%s4295_s2 + $0x30] sm:$0xff]  ;;  %v451_v27 = vld [vmem:[%s4295_s2 + $0x38] sm:$0xff]  ;;  %v1351_v32 = vld [vmem:[%s4297_s4] sm:$0xff]  ;;  %s4240_s26 = scalar_lea.vmem %s4304_s11, %s2879_s25 }
   0xe   : > { %464 = vperm.xlu1 %2907, %v446_v2   ;;  %v417_v6 = vld [vmem:[%s3370_s30 + $0xe8] sm:$0xff]  ;;  %v419_v7 = vld [vmem:[%s3370_s30 + $0xf8] sm:$0xff]  ;;  %v416_v8 = vld [vmem:[%s3370_s30 + $0xe0] sm:$0xff] }
   0xf   : > { %v435_v10 = vpack.c.bf16 %v419_v7, %v417_v6  ;;  %v418_v11 = vld [vmem:[%s3370_s30 + $0xf0] sm:$0xff]  ;;  %v413_v12 = vld [vmem:[%s3370_s30 + $0xc8] sm:$0xff]  ;;  %v415_v13 = vld [vmem:[%s3370_s30 + $0xd8] sm:$0xff] }
  0x10   : > { %v434_v14 = vpack.c.bf16 %v418_v11, %v416_v8  ;;  %v433_v15 = vpack.c.bf16 %v415_v13, %v413_v12  ;;  %v412_v16 = vld [vmem:[%s3370_s30 + $0xc0] sm:$0xff]  ;;  %v414_v17 = vld [vmem:[%s3370_s30 + $0xd0] sm:$0xff]  ;;  %v409_v18 = vld [vmem:[%s3370_s30 + $0xa8] sm:$0xff] }
  0x11   : > { %459 = vperm.xlu0 %2906, %v445_v3   ;;  %516 = vmatprep.subr.bf16.mxu0 %v435_v10  ;;  %v411_v19 = vld [vmem:[%s3370_s30 + $0xb8] sm:$0xff]  ;;  %v432_v20 = vpack.c.bf16 %v414_v17, %v412_v16  ;;  %v408_v22 = vld [vmem:[%s3370_s30 + $0xa0] sm:$0xff]  ;;  %v410_v23 = vld [vmem:[%s3370_s30 + $0xb0] sm:$0xff] }
  0x12   : > { %469 = vperm.xlu1 %2907, %v447_v4   ;;  %517 = vmatpush1.bf16.msra.mxu0 %v434_v14  ;;  %v431_v21 = vpack.c.bf16 %v411_v19, %v409_v18  ;;  %v405_v25 = vld [vmem:[%s3370_s30 + $0x88] sm:$0xff]  ;;  %v407_v26 = vld [vmem:[%s3370_s30 + $0x98] sm:$0xff]  ;;  %v430_v28 = vpack.c.bf16 %v410_v23, %v408_v22  ;;  %v404_v30 = vld [vmem:[%s3370_s30 + $0x80] sm:$0xff] }
  0x13   : > { %518 = vmatprep.subr.bf16.mxu0 %v433_v15  ;;  %v429_v29 = vpack.c.bf16 %v407_v26, %v405_v25  ;;  %v406_v31 = vld [vmem:[%s3370_s30 + $0x90] sm:$0xff]  ;;  %v401_v33 = vld [vmem:[%s3370_s30 + $0x68] sm:$0xff]  ;;  %v403_v34 = vld [vmem:[%s3370_s30 + $0x78] sm:$0xff] }
  0x14   : > { %v1352_v35 = vld [vmem:[%s4297_s4 + $0x8] sm:$0xff]  ;;  %v428_v36 = vpack.c.bf16 %v406_v31, %v404_v30  ;;  %v427_v37 = vpack.c.bf16 %v403_v34, %v401_v33  ;;  %v400_v38 = vld [vmem:[%s3370_s30 + $0x60] sm:$0xff]  ;;  %v402_v39 = vld [vmem:[%s3370_s30 + $0x70] sm:$0xff] }
  0x15   : > { %474 = vperm.xlu0 %2906, %v448_v5   ;;  %v1359_v40 = vld [vmem:[%s4297_s4 + $0x40] sm:$0xff]  ;;  %v397_v41 = vld [vmem:[%s3370_s30 + $0x48] sm:$0xff]  ;;  %v399_v42 = vld [vmem:[%s3370_s30 + $0x58] sm:$0xff]  ;;  %v426_v44 = vpack.c.bf16 %v402_v39, %v400_v38 }
  0x16   : > { %479 = vperm.xlu1 %2907, %v449_v9   ;;  %519 = vmatpush1.bf16.msra.mxu0 %v432_v20  ;;  %v1360_v43 = vld [vmem:[%s4297_s4 + $0x48] sm:$0xff]  ;;  %v425_v45 = vpack.c.bf16 %v399_v42, %v397_v41  ;;  %v396_v46 = vld [vmem:[%s3370_s30 + $0x40] sm:$0xff]  ;;  %v398_v47 = vld [vmem:[%s3370_s30 + $0x50] sm:$0xff] }
  0x17   : > { %520 = vmatprep.subr.bf16.mxu0 %v431_v21  ;;  %v1353_v48 = vld [vmem:[%s4297_s4 + $0x10] sm:$0xff]  ;;  %v393_v49 = vld [vmem:[%s3370_s30 + $0x28] sm:$0xff]  ;;  %v395_v50 = vld [vmem:[%s3370_s30 + $0x38] sm:$0xff]  ;;  %v424_v52 = vpack.c.bf16 %v398_v47, %v396_v46 }
  0x18   : > { %v1354_v51 = vld [vmem:[%s4297_s4 + $0x18] sm:$0xff]  ;;  %v392_v53 = vld [vmem:[%s3370_s30 + $0x20] sm:$0xff]  ;;  %v394_v54 = vld [vmem:[%s3370_s30 + $0x30] sm:$0xff]  ;;  %v423_v56 = vpack.c.bf16 %v395_v50, %v393_v49 }
  0x19   : > { %484 = vperm.xlu0 %2906, %v450_v24   ;;  %v389_v55 = vld [vmem:[%s3370_s30 + $0x8] sm:$0xff]  ;;  %v391_v57 = vld [vmem:[%s3370_s30 + $0x18] sm:$0xff]  ;;  %v1361_v58 = vld [vmem:[%s4297_s4 + $0x50] sm:$0xff]  ;;  %v422_v63 = vpack.c.bf16 %v394_v54, %v392_v53 }
  0x1a   : > { %489 = vperm.xlu1 %2907, %v451_v27   ;;  %521 = vmatpush1.bf16.msra.mxu0 %v430_v28  ;;  %v1362_v59 = vld [vmem:[%s4297_s4 + $0x58] sm:$0xff]  ;;  %v388_v60 = vld [vmem:[%s3370_s30] sm:$0xff]  ;;  %v390_v61 = vld [vmem:[%s3370_s30 + $0x10] sm:$0xff]  ;;  %v421_v2 = vpack.c.bf16 %v391_v57, %v389_v55 }
  0x1b   : > { %522 = vmatprep.subr.bf16.mxu0 %v429_v29  ;;  %v1355_v62 = vld [vmem:[%s4297_s4 + $0x20] sm:$0xff]  ;;  %v1356_v0 = vld [vmem:[%s4297_s4 + $0x28] sm:$0xff]  ;;  %v420_v4 = vpack.c.bf16 %v390_v61, %v388_v60  ;;  %v1357_v7 = vld [vmem:[%s4297_s4 + $0x30] sm:$0xff] }
  0x1c   : > { %v1363_v3 = vld [vmem:[%s4297_s4 + $0x60] sm:$0xff]  ;;  %v1364_v5 = vld [vmem:[%s4297_s4 + $0x68] sm:$0xff]  ;;  %v1358_v8 = vld [vmem:[%s4297_s4 + $0x38] sm:$0xff] }
  0x1d   : > { %1369 = vperm.xlu0 %2906, %v1351_v32   ;;  %v2908_v6 = vld [vmem:[%s4294_s1] sm:$0xff]   ;;  %v1365_v9 = vld [vmem:[%s4297_s4 + $0x70] sm:$0xff]  ;;  %v1366_v10 = vld [vmem:[%s4297_s4 + $0x78] sm:$0xff] }
  0x1e   : > { %1374 = vperm.xlu1 %2907, %v1352_v35   ;;  %523 = vmatpush1.bf16.msra.mxu0 %v428_v36  ;;  %v2909_v11 = vld [vmem:[%s4294_s1 + $0x8] sm:$0xff]   ;;  %v2363_v12 = vld [vmem:[%s4303_s10] sm:$0xff]  ;;  %v2365_v14 = vld [vmem:[%s4303_s10 + $0x10] sm:$0xff] }
  0x1f   : > { %524 = vmatprep.subr.bf16.mxu0 %v427_v37  ;;  %v2364_v13 = vld [vmem:[%s4303_s10 + $0x8] sm:$0xff]  ;;  %v2366_v15 = vld [vmem:[%s4303_s10 + $0x18] sm:$0xff]  ;;  %v2910_v16 = vld [vmem:[%s4294_s1 + $0x10] sm:$0xff]  }
  0x20   : > { %v2367_v17 = vld [vmem:[%s4303_s10 + $0x20] sm:$0xff]  ;;  %v2368_v18 = vld [vmem:[%s4303_s10 + $0x28] sm:$0xff]  ;;  %v2369_v19 = vld [vmem:[%s4303_s10 + $0x30] sm:$0xff] }
  0x21   : > { %1409 = vperm.xlu0 %2906, %v1359_v40   ;;  %v2912_v20 = vld [vmem:[%s4298_s5 + $0x74] ss:$8 sps:$4 sm:$0xff]   ;;  %v2914_v21 = vld [vmem:[%s4299_s6 + $0x70] ss:$8 sps:$4 sm:$0xff]   ;;  %v2371_v26 = vld [vmem:[%s4303_s10 + $0x40] sm:$0xff] }
  0x22   : > { %1414 = vperm.xlu1 %2907, %v1360_v43   ;;  %525 = vmatpush1.bf16.msra.mxu0 %v426_v44  ;;  %v2916_v22 = vld [vmem:[%s4299_s6 + $0x74] ss:$8 sps:$4 sm:$0xff]   ;;  %v2917_v24 = vld [vmem:[%s4298_s5 + $0x70] ss:$8 sps:$4 sm:$0xff]   ;;  %v2918_v27 = vld [vmem:[%s4298_s5 + $0x64] ss:$8 sps:$4 sm:$0xff]  }
  0x23   : > { %526 = vmatprep.subr.bf16.mxu0 %v425_v45  ;;  %v2370_v23 = vld [vmem:[%s4303_s10 + $0x38] sm:$0xff]  ;;  %981 = vmatprep.subr.bf16.mxu1 %v2912_v20  ;;  %v2920_v28 = vld [vmem:[%s4299_s6 + $0x60] ss:$8 sps:$4 sm:$0xff]   ;;  %v2922_v29 = vld [vmem:[%s4299_s6 + $0x64] ss:$8 sps:$4 sm:$0xff]  }
  0x24   : > { %v2911_v25 = vld [vmem:[%s4294_s1 + $0x18] sm:$0xff]   ;;  %982 = vmatpush1.bf16.msra.mxu1 %v2917_v24  ;;  %v2372_v30 = vld [vmem:[%s4303_s10 + $0x48] sm:$0xff]  ;;  %v2373_v32 = vld [vmem:[%s4303_s10 + $0x50] sm:$0xff] }
  0x25   : > { %1379 = vperm.xlu0 %2906, %v1353_v48   ;;  %v2923_v31 = vld [vmem:[%s4298_s5 + $0x60] ss:$8 sps:$4 sm:$0xff]   ;;  %983 = vmatprep.subr.bf16.mxu1 %v2918_v27  ;;  %v2924_v33 = vld [vmem:[%s4298_s5 + $0x54] ss:$8 sps:$4 sm:$0xff]   ;;  %v2926_v34 = vld [vmem:[%s4299_s6 + $0x50] ss:$8 sps:$4 sm:$0xff]  }
  0x26   : > { %1384 = vperm.xlu1 %2907, %v1354_v51   ;;  %527 = vmatpush1.bf16.msra.mxu0 %v424_v52  ;;  %v2928_v35 = vld [vmem:[%s4299_s6 + $0x54] ss:$8 sps:$4 sm:$0xff]   ;;  %v2929_v37 = vld [vmem:[%s4298_s5 + $0x50] ss:$8 sps:$4 sm:$0xff]   ;;  %v2375_v38 = vld [vmem:[%s4303_s10 + $0x60] sm:$0xff] }
  0x27   : > { %528 = vmatprep.subr.bf16.mxu0 %v423_v56  ;;  %v2374_v36 = vld [vmem:[%s4303_s10 + $0x58] sm:$0xff]  ;;  %v2930_v39 = vld [vmem:[%s4298_s5 + $0x44] ss:$8 sps:$4 sm:$0xff]   ;;  %v2932_v40 = vld [vmem:[%s4299_s6 + $0x40] ss:$8 sps:$4 sm:$0xff]  }
  0x28   : > { %984 = vmatpush1.bf16.msra.mxu1 %v2923_v31  ;;  %v2934_v41 = vld [vmem:[%s4299_s6 + $0x44] ss:$8 sps:$4 sm:$0xff]   ;;  %v2377_v43 = vld [vmem:[%s4303_s10 + $0x70] sm:$0xff]  ;;  %v2378_v44 = vld [vmem:[%s4303_s10 + $0x78] sm:$0xff] }
  0x29   : > { %1419 = vperm.xlu0 %2906, %v1361_v58   ;;  %985 = vmatprep.subr.bf16.mxu1 %v2924_v33  ;;  %v2376_v42 = vld [vmem:[%s4303_s10 + $0x68] sm:$0xff]  ;;  %v2936_v46 = vld [vmem:[%s4298_s5 + $0x34] ss:$8 sps:$4 sm:$0xff]   ;;  %v2938_v48 = vld [vmem:[%s4299_s6 + $0x30] ss:$8 sps:$4 sm:$0xff]  }
  0x2a   : > { %1424 = vperm.xlu1 %2907, %v1362_v59   ;;  %529 = vmatpush1.bf16.msra.mxu0 %v422_v63  ;;  %v2935_v45 = vld [vmem:[%s4298_s5 + $0x40] ss:$8 sps:$4 sm:$0xff]   ;;  %v2940_v47 = vld [vmem:[%s4299_s6 + $0x34] ss:$8 sps:$4 sm:$0xff]   ;;  %v2941_v49 = vld [vmem:[%s4298_s5 + $0x30] ss:$8 sps:$4 sm:$0xff]  }
  0x2b   : > { %530 = vmatprep.subr.bf16.mxu0 %v421_v2  ;;  %v2942_v50 = vld [vmem:[%s4298_s5 + $0x24] ss:$8 sps:$4 sm:$0xff]   ;;  %v2944_v52 = vld [vmem:[%s4299_s6 + $0x20] ss:$8 sps:$4 sm:$0xff]   ;;  %v2948_v54 = vld [vmem:[%s4298_s5 + $0x14] ss:$8 sps:$4 sm:$0xff]  }
  0x2c   : > { %986 = vmatpush1.bf16.msra.mxu1 %v2929_v37  ;;  %v2946_v51 = vld [vmem:[%s4299_s6 + $0x24] ss:$8 sps:$4 sm:$0xff]   ;;  %v2947_v53 = vld [vmem:[%s4298_s5 + $0x20] ss:$8 sps:$4 sm:$0xff]   ;;  %v2952_v55 = vld [vmem:[%s4299_s6 + $0x14] ss:$8 sps:$4 sm:$0xff]  }
  0x2d   : > { %1389 = vperm.xlu0 %2906, %v1355_v62   ;;  %987 = vmatprep.subr.bf16.mxu1 %v2930_v39  ;;  %v2950_v56 = vld [vmem:[%s4299_s6 + $0x10] ss:$8 sps:$4 sm:$0xff]   ;;  %v2954_v58 = vld [vmem:[%s4298_s5 + $0x4] ss:$8 sps:$4 sm:$0xff]   ;;  %v2956_v60 = vld [vmem:[%s4299_s6] ss:$8 sps:$4 sm:$0xff]  }
  0x2e   : > { %1394 = vperm.xlu1 %2907, %v1356_v0   ;;  %531 = vmatpush1.bf16.msra.mxu0 %v420_v4  ;;  %v2953_v57 = vld [vmem:[%s4298_s5 + $0x10] ss:$8 sps:$4 sm:$0xff]   ;;  %v2958_v59 = vld [vmem:[%s4299_s6 + $0x4] ss:$8 sps:$4 sm:$0xff]   ;;  %v2959_v61 = vld [vmem:[%s4298_s5] ss:$8 sps:$4 sm:$0xff]  }
  0x2f   : > { %1246 = vmatprep.subr.bf16.mxu0 %v2916_v22  ;;  %v2960_v62 = vld [vmem:[%s4298_s5 + $0xf4] ss:$8 sps:$4 sm:$0xff]   ;;  %v2962_v0 = vld [vmem:[%s4299_s6 + $0xf0] ss:$8 sps:$4 sm:$0xff]   ;;  %v2970_v4 = vld [vmem:[%s4299_s6 + $0xe4] ss:$8 sps:$4 sm:$0xff]  }
  0x30   : > { %988 = vmatpush1.bf16.msra.mxu1 %v2935_v45  ;;  %v2964_v63 = vld [vmem:[%s4299_s6 + $0xf4] ss:$8 sps:$4 sm:$0xff]   ;;  %v2965_v2 = vld [vmem:[%s4298_s5 + $0xf0] ss:$8 sps:$4 sm:$0xff]   ;;  %v2994_v20 = vld [vmem:[%s4299_s6 + $0xa4] ss:$8 sps:$4 sm:$0xff]  }
  0x31   : > { %1429 = vperm.xlu0 %2906, %v1363_v3   ;;  %549 = vmatmul.mubr.bf16.vlgmr.msra.gmra.mxu0 %v2908_v6  ;;  %v2966_v3 = vld [vmem:[%s4298_s5 + $0xe4] ss:$8 sps:$4 sm:$0xff]   ;;  %v2971_v6 = vld [vmem:[%s4298_s5 + $0xe0] ss:$8 sps:$4 sm:$0xff]   ;;  %v3000_v24 = vld [vmem:[%s4299_s6 + $0x94] ss:$8 sps:$4 sm:$0xff]  }
  0x32   : > { %1434 = vperm.xlu1 %2907, %v1364_v5   ;;  %558 = vmatprep.mubr.bf16.mxu0 %v3278_v1  ;;  %v2968_v5 = vld [vmem:[%s4299_s6 + $0xe0] ss:$8 sps:$4 sm:$0xff]   ;;  %v3002_v27 = vld [vmem:[%s4298_s5 + $0x84] ss:$8 sps:$4 sm:$0xff]  }
  0x33   : > { %1247 = vmatpush1.bf16.msra.mxu0 %v2914_v21  ;;  %989 = vmatprep.subr.bf16.mxu1 %v2936_v46  ;;  %v2992_v21 = vld [vmem:[%s4299_s6 + $0xa0] ss:$8 sps:$4 sm:$0xff]  }
  0x34   : > { %1248 = vmatprep.subr.bf16.mxu0 %v2922_v29  ;;  %990 = vmatpush1.bf16.msra.mxu1 %v2941_v49  ;;  %v2995_v22 = vld [vmem:[%s4298_s5 + $0xa0] ss:$8 sps:$4 sm:$0xff]  }
  0x35   : > { %1399 = vperm.xlu0 %2906, %v1357_v7   ;;  %991 = vmatprep.subr.bf16.mxu1 %v2942_v50  ;;  %v2972_v7 = vld [vmem:[%s4298_s5 + $0xd4] ss:$8 sps:$4 sm:$0xff]   ;;  %v3004_v29 = vld [vmem:[%s4299_s6 + $0x80] ss:$8 sps:$4 sm:$0xff]  }
  0x36   : > { %1404 = vperm.xlu1 %2907, %v1358_v8   ;;  %v2976_v8 = vld [vmem:[%s4299_s6 + $0xd4] ss:$8 sps:$4 sm:$0xff]  }
  0x37   : > { %1249 = vmatpush1.bf16.msra.mxu0 %v2920_v28  ;;  %v3006_v28 = vld [vmem:[%s4299_s6 + $0x84] ss:$8 sps:$4 sm:$0xff]  }
  0x38   : > { %1250 = vmatprep.subr.bf16.mxu0 %v2928_v35  ;;  %992 = vmatpush1.bf16.msra.mxu1 %v2947_v53 }
  0x39   : > { %1439 = vperm.xlu0 %2906, %v1365_v9   ;;  %559 = vmatmul.mubr.bf16.gmra.mxu0 %v2909_v11  ;;  %v2974_v9 = vld [vmem:[%s4299_s6 + $0xd0] ss:$8 sps:$4 sm:$0xff]   ;;  %v2978_v11 = vld [vmem:[%s4298_s5 + $0xc4] ss:$8 sps:$4 sm:$0xff]  }
  0x3a   : > { %1444 = vperm.xlu1 %2907, %v1366_v10   ;;  %568 = vmatprep.mubr.bf16.mxu0 %v3278_v1  ;;  %v2977_v10 = vld [vmem:[%s4298_s5 + $0xd0] ss:$8 sps:$4 sm:$0xff]  }
  0x3b   : > { %1251 = vmatpush1.bf16.msra.mxu0 %v2926_v34  ;;  %993 = vmatprep.subr.bf16.mxu1 %v2948_v54 }
  0x3c   : > { %1252 = vmatprep.subr.bf16.mxu0 %v2934_v41  ;;  %994 = vmatpush1.bf16.msra.mxu1 %v2953_v57 }
  0x3d   : > { %2381 = vperm.xlu0 %2906, %v2363_v12   ;;  %995 = vmatprep.subr.bf16.mxu1 %v2954_v58  ;;  %v2982_v12 = vld [vmem:[%s4299_s6 + $0xc4] ss:$8 sps:$4 sm:$0xff]  }
  0x3e   : > { %2386 = vperm.xlu1 %2907, %v2364_v13   ;;  %v2980_v13 = vld [vmem:[%s4299_s6 + $0xc0] ss:$8 sps:$4 sm:$0xff]  }
  0x3f   : > { %1253 = vmatpush1.bf16.msra.mxu0 %v2932_v40 }
  0x40   : > { %1254 = vmatprep.subr.bf16.mxu0 %v2940_v47  ;;  %996 = vmatpush1.bf16.msra.mxu1 %v2959_v61 }
  0x41   : > { %2391 = vperm.xlu0 %2906, %v2365_v14   ;;  %569 = vmatmul.mubr.bf16.gmra.mxu0 %v2910_v16  ;;  %v2983_v14 = vld [vmem:[%s4298_s5 + $0xc0] ss:$8 sps:$4 sm:$0xff]   ;;  %v2988_v16 = vld [vmem:[%s4299_s6 + $0xb4] ss:$8 sps:$4 sm:$0xff]  }
  0x42   : > { %2396 = vperm.xlu1 %2907, %v2366_v15   ;;  %578 = vmatprep.mubr.bf16.mxu0 %v3278_v1  ;;  %v2984_v15 = vld [vmem:[%s4298_s5 + $0xb4] ss:$8 sps:$4 sm:$0xff]  }
  0x43   : > { %1255 = vmatpush1.bf16.msra.mxu0 %v2938_v48  ;;  %997 = vmatprep.subr.bf16.mxu1 %v2960_v62 }
  0x44   : > { %1256 = vmatprep.subr.bf16.mxu0 %v2946_v51  ;;  %998 = vmatpush2.bf16.msra.mxu1 %v2965_v2 }
  0x45   : > { %2401 = vperm.xlu0 %2906, %v2367_v17   ;;  %999 = vmatprep.subr.bf16.mxu1 %v2966_v3  ;;  %v2986_v17 = vld [vmem:[%s4299_s6 + $0xb0] ss:$8 sps:$4 sm:$0xff]  }
  0x46   : > { %2406 = vperm.xlu1 %2907, %v2368_v18   ;;  %v2989_v18 = vld [vmem:[%s4298_s5 + $0xb0] ss:$8 sps:$4 sm:$0xff]  }
  0x47   : > { %1257 = vmatpush1.bf16.msra.mxu0 %v2944_v52 }
  0x48   : > { %1258 = vmatprep.subr.bf16.mxu0 %v2952_v55  ;;  %1000 = vmatpush2.bf16.msra.mxu1 %v2971_v6 }
  0x49   : > { %2411 = vperm.xlu0 %2906, %v2369_v19   ;;  %579 = vmatmul.mubr.bf16.gmra.mxu0 %v2911_v25  ;;  %v2990_v19 = vld [vmem:[%s4298_s5 + $0xa4] ss:$8 sps:$4 sm:$0xff]   ;;  %v2998_v25 = vld [vmem:[%s4299_s6 + $0x90] ss:$8 sps:$4 sm:$0xff]  }
  0x4a   : > { %2416 = vperm.xlu1 %2907, %v2370_v23   ;;  %1001 = vmatprep.subr.bf16.mxu1 %v2972_v7  ;;  %v2996_v23 = vld [vmem:[%s4298_s5 + $0x94] ss:$8 sps:$4 sm:$0xff]  }
  0x4b   : > { %1259 = vmatpush1.bf16.msra.mxu0 %v2950_v56 }
  0x4c   : > { %1260 = vmatprep.subr.bf16.mxu0 %v2958_v59  ;;  %1002 = vmatpush2.bf16.msra.mxu1 %v2977_v10 }
  0x4d   : > { %2421 = vperm.xlu0 %2906, %v2371_v26   ;;  %1003 = vmatprep.subr.bf16.mxu1 %v2978_v11  ;;  %v3001_v26 = vld [vmem:[%s4298_s5 + $0x90] ss:$8 sps:$4 sm:$0xff]  }
  0x4e   : > { %2426 = vperm.xlu1 %2907, %v2372_v30   ;;  %v3007_v30 = vld [vmem:[%s4298_s5 + $0x80] ss:$8 sps:$4 sm:$0xff]  }
  0x4f   : > { %1261 = vmatpush1.bf16.msra.mxu0 %v2956_v60 }
  0x50   : > { %1262 = vmatprep.subr.bf16.mxu0 %v2964_v63  ;;  %1004 = vmatpush2.bf16.msra.mxu1 %v2983_v14 }
  0x51   : > { %2431 = vperm.xlu0 %2906, %v2373_v32   ;;  %1005 = vmatprep.subr.bf16.mxu1 %v2984_v15 }
  0x52   : > { %2436 = vperm.xlu1 %2907, %v2374_v36  }
  0x53   : > { %1263 = vmatpush2.bf16.msra.mxu0 %v2962_v0 }
  0x54   : > { %1264 = vmatprep.subr.bf16.mxu0 %v2970_v4  ;;  %1006 = vmatpush2.bf16.msra.mxu1 %v2989_v18 }
  0x55   : > { %2441 = vperm.xlu0 %2906, %v2375_v38   ;;  %1007 = vmatprep.subr.bf16.mxu1 %v2990_v19 }
  0x56   : > { %2446 = vperm.xlu1 %2907, %v2376_v42  }
  0x57   : > { %1265 = vmatpush2.bf16.msra.mxu0 %v2968_v5 }
  0x58   : > { %1266 = vmatprep.subr.bf16.mxu0 %v2976_v8  ;;  %1008 = vmatpush2.bf16.msra.mxu1 %v2995_v22 }
  0x59   : > { %2451 = vperm.xlu0 %2906, %v2377_v43   ;;  %1009 = vmatprep.subr.bf16.mxu1 %v2996_v23 }
  0x5a   : > { %2456 = vperm.xlu1 %2907, %v2378_v44  }
  0x5b   : > { %1267 = vmatpush2.bf16.msra.mxu0 %v2974_v9 }
  0x5c   : > { %1268 = vmatprep.subr.bf16.mxu0 %v2982_v12  ;;  %1010 = vmatpush2.bf16.msra.mxu1 %v3001_v26 }
  0x5d   : > { %1011 = vmatprep.subr.bf16.mxu1 %v3002_v27 }
  0x5f   : > { %1269 = vmatpush2.bf16.msra.mxu0 %v2980_v13 }
  0x60   : > { %1270 = vmatprep.subr.bf16.mxu0 %v2988_v16  ;;  %1012 = vmatpush2.bf16.msra.mxu1 %v3007_v30 }
  0x63   : > { %1271 = vmatpush2.bf16.msra.mxu0 %v2986_v17 }
  0x64   : > { %1272 = vmatprep.subr.bf16.mxu0 %v2994_v20 }
  0x67   : > { %1273 = vmatpush2.bf16.msra.mxu0 %v2992_v21 }
  0x68   : > { %1274 = vmatprep.subr.bf16.mxu0 %v3000_v24 }
  0x6b   : > { %1275 = vmatpush2.bf16.msra.mxu0 %v2998_v25 }
  0x6c   : > { %1276 = vmatprep.subr.bf16.mxu0 %v3006_v28 }
  0x6f   : > { %1277 = vmatpush2.bf16.msra.mxu0 %v3004_v29 }
  0x88   : > { %v455_v31 = vpop.permute.xlu0 %454 }
  0x89   : > { %v465_v42 = vpop.permute.xlu1 %464 }
  0x8c   : > { %v460_v37 = vpop.permute.xlu0 %459 }
  0x8d   : > { %v470_v60 = vpop.permute.xlu1 %469 }
  0x90   : > { %v475_v10 = vpop.permute.xlu0 %474 }
  0x91   : > { %v480_v23 = vpop.permute.xlu1 %479 }
  0xf1   : > { %v550_v32 = vpop.f32.mrf.mxu0 }
  0xf2   : > { %v551_v33 = vadd.f32 %v550_v32, %v455_v31 }
  0xf3   : > { %v552_v34 = vpop.f32.mrf.mxu0 }
  0xf4   : > { %vm589_vm0 = vcmp.ge.f32.partialorder %v551_v33, 0.0  ;;  %v605_v35 = vmul.f32 0.2, %v551_v33  ;;  %v553_v36 = vadd.f32 %v552_v34, %v455_v31 }
  0xf5   : > { %v554_v38 = vpop.f32.mrf.mxu0 }
  0xf6   : > { %v3719_v39 = vsel %vm589_vm0, %v551_v33, %v605_v35  ;;  %vm590_vm1 = vcmp.ge.f32.partialorder %v553_v36, 0.0  ;;  %v606_v40 = vmul.f32 0.2, %v553_v36  ;;  %v555_v41 = vadd.f32 %v554_v38, %v460_v37 }
  0xf7   : > { %v637_v43 = vsub.f32 0.0, %v3719_v39  ;;  %v556_v44 = vpop.f32.mrf.mxu0 }
  0xf8   : > { %vm591_vm2 = vcmp.ge.f32.partialorder %v555_v41, 0.0  ;;  %v607_v45 = vmul.f32 0.2, %v555_v41  ;;  %v557_v46 = vadd.f32 %v556_v44, %v460_v37  ;;  %v3722_v47 = vsel %vm590_vm1, %v553_v36, %v606_v40  ;;  %v485_v37 = vpop.permute.xlu0 %484 }
  0xf9   : > { %v653_v48 = vmul.f32 1.442695, %v637_v43  ;;  %v560_v49 = vpop.f32.mrf.mxu0  ;;  %v638_v50 = vsub.f32 0.0, %v3722_v47 }
  0xfa   : > { %v3725_v51 = vsel %vm591_vm2, %v555_v41, %v607_v45  ;;  %vm592_vm3 = vcmp.ge.f32.partialorder %v557_v46, 0.0  ;;  %v608_v52 = vmul.f32 0.2, %v557_v46  ;;  %v561_v53 = vadd.f32 %v560_v49, %v465_v42 }
  0xfb   : > { %3078 = vpow2.f32 %v653_v48  ;;  %v639_v54 = vsub.f32 0.0, %v3725_v51  ;;  %v562_v55 = vpop.f32.mrf.mxu0  ;;  %v655_v56 = vmul.f32 1.442695, %v638_v50 }
  0xfc   : > { %vm593_vm4 = vcmp.ge.f32.partialorder %v561_v53, 0.0  ;;  %v609_v57 = vmul.f32 0.2, %v561_v53  ;;  %v563_v58 = vadd.f32 %v562_v55, %v465_v42  ;;  %v3728_v59 = vsel %vm592_vm3, %v557_v46, %v608_v52 }
  0xfd   : > { %v657_v61 = vmul.f32 1.442695, %v639_v54  ;;  %v564_v62 = vpop.f32.mrf.mxu0  ;;  %v640_v63 = vsub.f32 0.0, %v3728_v59  ;;  %3080 = vpow2.f32 %v655_v56  ;;  %v490_v56 = vpop.permute.xlu1 %489 }
  0xfe   : > { %v3731_v0 = vsel %vm593_vm4, %v561_v53, %v609_v57  ;;  %vm594_vm5 = vcmp.ge.f32.partialorder %v563_v58, 0.0  ;;  %v610_v2 = vmul.f32 0.2, %v563_v58  ;;  %v565_v3 = vadd.f32 %v564_v62, %v470_v60 }
  0xff   : > { %3082 = vpow2.f32 %v657_v61  ;;  %v641_v4 = vsub.f32 0.0, %v3731_v0  ;;  %v566_v5 = vpop.f32.mrf.mxu0  ;;  %v659_v6 = vmul.f32 1.442695, %v640_v63  ;;  %vm2038_vm4 = vcmask 130048  }
 0x100   : > { %v3734_v7 = vsel %vm594_vm5, %v563_v58, %v610_v2  ;;  %vm595_vm6 = vcmp.ge.f32.partialorder %v565_v3, 0.0  ;;  %v611_v8 = vmul.f32 0.2, %v565_v3  ;;  %v567_v9 = vadd.f32 %v566_v5, %v470_v60 }
 0x101   : > { %v661_v11 = vmul.f32 1.442695, %v641_v4  ;;  %v642_v12 = vsub.f32 0.0, %v3734_v7  ;;  %v570_v13 = vpop.f32.mrf.mxu0  ;;  %3084 = vpow2.f32 %v659_v6 }
 0x102   : > { %v3737_v14 = vsel %vm595_vm6, %v565_v3, %v611_v8  ;;  %vm596_vm7 = vcmp.ge.f32.partialorder %v567_v9, 0.0  ;;  %v612_v15 = vmul.f32 0.2, %v567_v9  ;;  %v571_v16 = vadd.f32 %v570_v13, %v475_v10 }
 0x103   : > { %3086 = vpow2.f32 %v661_v11  ;;  %v663_v17 = vmul.f32 1.442695, %v642_v12  ;;  %v643_v18 = vsub.f32 0.0, %v3737_v14  ;;  %v572_v19 = vpop.f32.mrf.mxu0 }
 0x104   : > { %v3740_v20 = vsel %vm596_vm7, %v567_v9, %v612_v15  ;;  %vm597_vm8 = vcmp.ge.f32.partialorder %v571_v16, 0.0  ;;  %v613_v21 = vmul.f32 0.2, %v571_v16  ;;  %v573_v22 = vadd.f32 %v572_v19, %v475_v10 }
 0x105   : > { %3088 = vpow2.f32 %v663_v17  ;;  %v665_v24 = vmul.f32 1.442695, %v643_v18  ;;  %v644_v25 = vsub.f32 0.0, %v3740_v20  ;;  %v574_v26 = vpop.f32.mrf.mxu0 }
 0x106   : > { %v3743_v27 = vsel %vm597_vm8, %v571_v16, %v613_v21  ;;  %vm598_vm9 = vcmp.ge.f32.partialorder %v573_v22, 0.0  ;;  %v614_v28 = vmul.f32 0.2, %v573_v22  ;;  %v575_v29 = vadd.f32 %v574_v26, %v480_v23 }
 0x107   : > { %3090 = vpow2.f32 %v665_v24  ;;  %v667_v30 = vmul.f32 1.442695, %v644_v25  ;;  %v645_v31 = vsub.f32 0.0, %v3743_v27  ;;  %v576_v32 = vpop.f32.mrf.mxu0 }
 0x108   : > { %v3079_v33 = vpop.eup %3078  ;;  %v3746_v34 = vsel %vm598_vm9, %v573_v22, %v614_v28  ;;  %vm599_vm10 = vcmp.ge.f32.partialorder %v575_v29, 0.0  ;;  %v615_v35 = vmul.f32 0.2, %v575_v29  ;;  %v577_v36 = vadd.f32 %v576_v32, %v480_v23 }
 0x109   : > { %v685_v38 = vadd.f32 1.0, %v3079_v33  ;;  %3092 = vpow2.f32 %v667_v30  ;;  %v669_v40 = vmul.f32 1.442695, %v645_v31  ;;  %v646_v41 = vsub.f32 0.0, %v3746_v34  ;;  %v580_v42 = vpop.f32.mrf.mxu0 }
 0x10a   : > { %v3081_v43 = vpop.eup %3080  ;;  %v3749_v44 = vsel %vm599_vm10, %v575_v29, %v615_v35  ;;  %vm600_vm11 = vcmp.ge.f32.partialorder %v577_v36, 0.0  ;;  %v616_v45 = vmul.f32 0.2, %v577_v36  ;;  %v581_v46 = vadd.f32 %v580_v42, %v485_v37 }
 0x10b   : > { %3094 = vrcp.f32 %v685_v38  ;;  %v671_v48 = vmul.f32 1.442695, %v646_v41  ;;  %v647_v49 = vsub.f32 0.0, %v3749_v44  ;;  %v582_v50 = vpop.f32.mrf.mxu0  ;;  %v686_v52 = vadd.f32 1.0, %v3081_v43 }
 0x10c   : > { %v3083_v53 = vpop.eup %3082  ;;  %3096 = vpow2.f32 %v669_v40  ;;  %v3752_v54 = vsel %vm600_vm11, %v577_v36, %v616_v45  ;;  %vm601_vm12 = vcmp.ge.f32.partialorder %v581_v46, 0.0  ;;  %v617_v55 = vmul.f32 0.2, %v581_v46 }
 0x10d   : > { %v687_v57 = vadd.f32 1.0, %v3083_v53  ;;  %3098 = vpow2.f32 %v671_v48  ;;  %v673_v58 = vmul.f32 1.442695, %v647_v49  ;;  %v648_v60 = vsub.f32 0.0, %v3752_v54  ;;  %v584_v61 = vpop.f32.mrf.mxu0 }
 0x10e   : > { %v3085_v62 = vpop.eup %3084  ;;  %v3755_v63 = vsel %vm601_vm12, %v581_v46, %v617_v55  ;;  %v583_v2 = vadd.f32 %v582_v50, %v485_v37  ;;  %v585_v3 = vadd.f32 %v584_v61, %v490_v56  ;;  %3100 = vrcp.f32 %v686_v52 }
 0x10f   : > { %3102 = vrcp.f32 %v687_v57  ;;  %v675_v4 = vmul.f32 1.442695, %v648_v60  ;;  %v649_v5 = vsub.f32 0.0, %v3755_v63  ;;  %v586_v6 = vpop.f32.mrf.mxu0  ;;  %v688_v8 = vadd.f32 1.0, %v3085_v62 }
 0x110   : > { %v3087_v9 = vpop.eup %3086  ;;  %3104 = vpow2.f32 %v673_v58  ;;  %vm602_vm13 = vcmp.ge.f32.partialorder %v583_v2, 0.0  ;;  %v618_v10 = vmul.f32 0.2, %v583_v2  ;;  %vm603_vm14 = vcmp.ge.f32.partialorder %v585_v3, 0.0 }
 0x111   : > { %v689_v11 = vadd.f32 1.0, %v3087_v9  ;;  %3106 = vpow2.f32 %v675_v4  ;;  %v677_v12 = vmul.f32 1.442695, %v649_v5  ;;  %v619_v13 = vmul.f32 0.2, %v585_v3 }
 0x112   : > { %v3089_v15 = vpop.eup %3088  ;;  %v3758_v16 = vsel %vm602_vm13, %v583_v2, %v618_v10  ;;  %v587_v17 = vadd.f32 %v586_v6, %v490_v56  ;;  %3108 = vrcp.f32 %v688_v8 }
 0x113   : > { %3110 = vrcp.f32 %v689_v11  ;;  %v690_v18 = vadd.f32 1.0, %v3089_v15  ;;  %v650_v19 = vsub.f32 0.0, %v3758_v16  ;;  %v3761_v21 = vsel %vm603_vm14, %v585_v3, %v619_v13 }
 0x114   : > { %v3091_v22 = vpop.eup %3090  ;;  %3112 = vpow2.f32 %v677_v12  ;;  %v651_v23 = vsub.f32 0.0, %v3761_v21  ;;  %vm604_vm15 = vcmp.ge.f32.partialorder %v587_v17, 0.0  ;;  %v620_v24 = vmul.f32 0.2, %v587_v17 }
 0x115   : > { %3114 = vrcp.f32 %v690_v18  ;;  %v691_v25 = vadd.f32 1.0, %v3091_v22  ;;  %v679_v26 = vmul.f32 1.442695, %v650_v19 }
 0x116   : > { %v3093_v28 = vpop.eup %3092  ;;  %v681_v29 = vmul.f32 1.442695, %v651_v23  ;;  %v3764_v30 = vsel %vm604_vm15, %v587_v17, %v620_v24 }
 0x117   : > { %3116 = vrcp.f32 %v691_v25  ;;  %v692_v31 = vadd.f32 1.0, %v3093_v28  ;;  %v652_v32 = vsub.f32 0.0, %v3764_v30 }
 0x118   : > { %v3095_v33 = vpop.eup %3094  ;;  %3118 = vpow2.f32 %v679_v26 }
 0x119   : > { %v3097_v35 = vpop.eup %3096  ;;  %3120 = vrcp.f32 %v692_v31  ;;  %v683_v36 = vmul.f32 1.442695, %v652_v32  ;;  %v717_v43 = vmul.f32 %v3095_v33, %v3719_v39 }
 0x11a   : > { %v3099_v37 = vpop.eup %3098  ;;  %v693_v38 = vadd.f32 1.0, %v3097_v35  ;;  %3122 = vpow2.f32 %v681_v29 }
 0x11b   : > { %v3101_v40 = vpop.eup %3100  ;;  %v694_v41 = vadd.f32 1.0, %v3099_v37  ;;  %3124 = vpow2.f32 %v683_v36 }
 0x11c   : > { %v3103_v42 = vpop.eup %3102  ;;  %3126 = vrcp.f32 %v693_v38  ;;  %v718_v45 = vmul.f32 %v3101_v40, %v3722_v47 }
 0x11d   : > { %v3105_v46 = vpop.eup %3104  ;;  %3128 = vrcp.f32 %v694_v41  ;;  %v719_v53 = vmul.f32 %v3103_v42, %v3725_v51 }
 0x11e   : > { %v3107_v48 = vpop.eup %3106  ;;  %v695_v49 = vadd.f32 1.0, %v3105_v46  ;;  %v3769_v50 = vpack.c.bf16 %v718_v45, %v717_v43 }
 0x11f   : > { %v3109_v52 = vpop.eup %3108  ;;  %v696_v55 = vadd.f32 1.0, %v3107_v48  ;;  %v733_v62 = vpack.c.bf16 %v719_v53, %v717_v43 }
 0x120   : > { %v3111_v56 = vpop.eup %3110  ;;  %3130 = vrcp.f32 %v695_v49  ;;  %v720_v57 = vmul.f32 %v3109_v52, %v3728_v59 }
 0x121   : > { %v3113_v58 = vpop.eup %3112  ;;  %3132 = vrcp.f32 %v696_v55  ;;  %v721_v3 = vmul.f32 %v3111_v56, %v3731_v0 }
 0x122   : > { %v3115_v39 = vpop.eup %3114  ;;  %v697_v60 = vadd.f32 1.0, %v3113_v58  ;;  %v734_v61 = vpack.c.bf16 %v720_v57, %v718_v45  ;;  %v3773_v47 = vpack.c.bf16 %v720_v57, %v719_v53 }
 0x123   : > { %v722_v2 = vmul.f32 %v3115_v39, %v3734_v7 }
 0x124   : > { %v3117_v4 = vpop.eup %3116  ;;  %1013 = vmatprep.mubr.bf16.mxu1 %v734_v61  ;;  %1278 = vmatprep.mubr.bf16.mxu0 %v734_v61  ;;  %3134 = vrcp.f32 %v697_v60 }
 0x125   : > { %v3119_v51 = vpop.eup %3118  ;;  %1014 = vmatmul.mubr.bf16.vlgmr.msra.gmra.mxu1 %v733_v62  ;;  %1279 = vmatmul.mubr.bf16.vlgmr.msra.gmra.mxu0 %v733_v62  ;;  %v3777_v5 = vpack.c.bf16 %v722_v2, %v721_v3  ;;  %v723_v10 = vmul.f32 %v3117_v4, %v3737_v14 }
 0x126   : > { %v3121_v59 = vpop.eup %3120  ;;  %v698_v6 = vadd.f32 1.0, %v3119_v51 }
 0x127   : > { %v3123_v8 = vpop.eup %3122  ;;  %v724_v9 = vmul.f32 %v3121_v59, %v3740_v20  ;;  %v735_v18 = vpack.c.bf16 %v723_v10, %v721_v3 }
 0x128   : > { %v3125_v11 = vpop.eup %3124  ;;  %3136 = vrcp.f32 %v698_v6  ;;  %v699_v7 = vadd.f32 1.0, %v3123_v8 }
 0x129   : > { %v3127_v0 = vpop.eup %3126  ;;  %v700_v12 = vadd.f32 1.0, %v3125_v11  ;;  %v736_v13 = vpack.c.bf16 %v724_v9, %v722_v2  ;;  %v3781_v15 = vpack.c.bf16 %v724_v9, %v723_v10 }
 0x12a   : > { %v3129_v17 = vpop.eup %3128  ;;  %3138 = vrcp.f32 %v699_v7  ;;  %v725_v20 = vmul.f32 %v3127_v0, %v3743_v27 }
 0x12b   : > { %3140 = vrcp.f32 %v700_v12  ;;  %1023 = vmatprep.mubr.bf16.mxu1 %v736_v13  ;;  %1288 = vmatprep.mubr.bf16.mxu0 %v736_v13  ;;  %v726_v19 = vmul.f32 %v3129_v17, %v3746_v34 }
 0x12d   : > { %v3131_v22 = vpop.eup %3130  ;;  %1024 = vmatmul.mubr.bf16.gmra.mxu1 %v735_v18  ;;  %1289 = vmatmul.mubr.bf16.gmra.mxu0 %v735_v18  ;;  %v3785_v14 = vpack.c.bf16 %v726_v19, %v725_v20 }
 0x12e   : > { %v3133_v23 = vpop.eup %3132  ;;  %v727_v25 = vmul.f32 %v3131_v22, %v3749_v44 }
 0x12f   : > { %v728_v24 = vmul.f32 %v3133_v23, %v3752_v54 }
 0x130   : > { %v737_v31 = vpack.c.bf16 %v727_v25, %v725_v20 }
 0x131   : > { %v738_v26 = vpack.c.bf16 %v728_v24, %v726_v19  ;;  %v3789_v28 = vpack.c.bf16 %v728_v24, %v727_v25  ;;  %v3135_v29 = vpop.eup %3134 }
 0x132   : > { %v729_v32 = vmul.f32 %v3135_v29, %v3755_v63 }
 0x133   : > { %1033 = vmatprep.mubr.bf16.mxu1 %v738_v26  ;;  %1298 = vmatprep.mubr.bf16.mxu0 %v738_v26 }
 0x135   : > { %v3137_v34 = vpop.eup %3136  ;;  %1034 = vmatmul.mubr.bf16.gmra.mxu1 %v737_v31  ;;  %1299 = vmatmul.mubr.bf16.gmra.mxu0 %v737_v31 }
 0x136   : > { %v730_v27 = vmul.f32 %v3137_v34, %v3758_v16 }
 0x137   : > { %v3139_v33 = vpop.eup %3138 }
 0x138   : > { %v3141_v35 = vpop.eup %3140  ;;  %v731_v54 = vmul.f32 %v3139_v33, %v3761_v21  ;;  %v3794_v36 = vpack.c.bf16 %v730_v27, %v729_v32  ;;  %v3009_v33 = vld [vmem:[%s4296_s3 + $0x8] sm:$0xff]  }
 0x139   : > { %v732_v44 = vmul.f32 %v3141_v35, %v3764_v30  ;;  %v3010_v35 = vld [vmem:[%s4296_s3 + $0x10] sm:$0xff]  }
 0x13a   : > { %v739_v40 = vpack.c.bf16 %v731_v54, %v729_v32  ;;  %v3008_v32 = vld [vmem:[%s4296_s3] sm:$0xff]  }
 0x13b   : > { %v740_v37 = vpack.c.bf16 %v732_v44, %v730_v27  ;;  %v3797_v38 = vpack.c.bf16 %v732_v44, %v731_v54  ;;  %v3011_v54 = vld [vmem:[%s4296_s3 + $0x18] sm:$0xff]   ;;  %v3012_v44 = vld [vmem:[%s4296_s3 + $0x20] sm:$0xff]  }
 0x13d   : > { %1043 = vmatprep.mubr.bf16.mxu1 %v740_v37  ;;  %1308 = vmatprep.mubr.bf16.mxu0 %v740_v37  ;;  %v3013_v37 = vld [vmem:[%s4296_s3 + $0x28] sm:$0xff]  }
 0x13e   : > { %1044 = vmatmul.mubr.bf16.gmra.mxu1 %v739_v40  ;;  %1309 = vmatmul.mubr.bf16.gmra.mxu0 %v739_v40  ;;  %v3014_v40 = vld [vmem:[%s4296_s3 + $0x30] sm:$0xff]  }
 0x13f   : > { %1527 = vmatprep.mubr.bf16.mxu1 %v3278_v1 }
 0x1e5   : > { %v3800_v16 = vpop.f32.mrf.mxu1  ;;  %v1280_v63 = vpop.f32.mrf.mxu0 }
 0x1e7   : > { %v1017_v41 = vpop.f32.mrf.mxu1  ;;  %v1282_v42 = vpop.f32.mrf.mxu0 }
 0x1e9   : > { %v1019_v21 = vpop.f32.mrf.mxu1  ;;  %v1284_v43 = vpop.f32.mrf.mxu0 }
 0x1ea   : > { %v1327_v22 = vpack.c.bf16 %v1284_v43, %v1280_v63  ;;  %v1319_v27 = vpack.c.bf16 %v1019_v21, %v3800_v16  ;;  %v3015_v16 = vld [vmem:[%s4296_s3 + $0x38] sm:$0xff]   ;;  %v3019_v21 = vld [vmem:[%s4300_s7 + $0x60] ss:$8 sps:$4 sm:$0xff]  }
 0x1eb   : > { %v1021_v45 = vpop.f32.mrf.mxu1  ;;  %v1286_v46 = vpop.f32.mrf.mxu0  ;;  %v3018_v63 = vld [vmem:[%s4300_s7 + $0x74] ss:$8 sps:$4 sm:$0xff]  }
 0x1ec   : > { %v1328_v19 = vpack.c.bf16 %v1286_v46, %v1282_v42  ;;  %v1320_v34 = vpack.c.bf16 %v1021_v45, %v1017_v41  ;;  %v3016_v41 = vld [vmem:[%s4300_s7 + $0x70] ss:$8 sps:$4 sm:$0xff]   ;;  %v3021_v42 = vld [vmem:[%s4300_s7 + $0x64] ss:$8 sps:$4 sm:$0xff]   ;;  %v3024_v43 = vld [vmem:[%s4300_s7 + $0x54] ss:$8 sps:$4 sm:$0xff]  }
 0x1ed   : > { %v1025_v30 = vpop.f32.mrf.mxu1  ;;  %v1290_v48 = vpop.f32.mrf.mxu0  ;;  %v3022_v45 = vld [vmem:[%s4300_s7 + $0x50] ss:$8 sps:$4 sm:$0xff]   ;;  %v3027_v46 = vld [vmem:[%s4300_s7 + $0x44] ss:$8 sps:$4 sm:$0xff]  }
 0x1ef   : > { %v1027_v49 = vpop.f32.mrf.mxu1  ;;  %v1292_v52 = vpop.f32.mrf.mxu0 }
 0x1f1   : > { %v1029_v53 = vpop.f32.mrf.mxu1  ;;  %v1294_v55 = vpop.f32.mrf.mxu0 }
 0x1f2   : > { %v1329_v18 = vpack.c.bf16 %v1294_v55, %v1290_v48  ;;  %v1321_v31 = vpack.c.bf16 %v1029_v53, %v1025_v30  ;;  %v3025_v30 = vld [vmem:[%s4300_s7 + $0x40] ss:$8 sps:$4 sm:$0xff]   ;;  %v3030_v48 = vld [vmem:[%s4300_s7 + $0x34] ss:$8 sps:$4 sm:$0xff]  }
 0x1f3   : > { %v1031_v56 = vpop.f32.mrf.mxu1  ;;  %v1296_v57 = vpop.f32.mrf.mxu0  ;;  %v3031_v53 = vld [vmem:[%s4300_s7 + $0x20] ss:$8 sps:$4 sm:$0xff]   ;;  %v3036_v55 = vld [vmem:[%s4300_s7 + $0x14] ss:$8 sps:$4 sm:$0xff]  }
 0x1f4   : > { %v1330_v13 = vpack.c.bf16 %v1296_v57, %v1292_v52  ;;  %v1322_v29 = vpack.c.bf16 %v1031_v56, %v1027_v49  ;;  %v3028_v49 = vld [vmem:[%s4300_s7 + $0x30] ss:$8 sps:$4 sm:$0xff]   ;;  %v3033_v52 = vld [vmem:[%s4300_s7 + $0x24] ss:$8 sps:$4 sm:$0xff]  }
 0x1f5   : > { %v1035_v58 = vpop.f32.mrf.mxu1  ;;  %v1300_v39 = vpop.f32.mrf.mxu0  ;;  %v3034_v56 = vld [vmem:[%s4300_s7 + $0x10] ss:$8 sps:$4 sm:$0xff]   ;;  %v3039_v57 = vld [vmem:[%s4300_s7 + $0x4] ss:$8 sps:$4 sm:$0xff]  }
 0x1f7   : > { %v1302_v60 = vpop.f32.mrf.mxu0  ;;  %v1037_v61 = vpop.f32.mrf.mxu1 }
 0x1f9   : > { %v1304_v62 = vpop.f32.mrf.mxu0  ;;  %v1039_v3 = vpop.f32.mrf.mxu1 }
 0x1fa   : > { %v1331_v12 = vpack.c.bf16 %v1304_v62, %v1300_v39  ;;  %v1323_v26 = vpack.c.bf16 %v1039_v3, %v1035_v58  ;;  %v3037_v58 = vld [vmem:[%s4300_s7] ss:$8 sps:$4 sm:$0xff]   ;;  %v3042_v39 = vld [vmem:[%s4301_s8 + $0x74] ss:$8 sps:$4 sm:$0xff]  }
 0x1fb   : > { %v1306_v2 = vpop.f32.mrf.mxu0  ;;  %v1041_v51 = vpop.f32.mrf.mxu1  ;;  %v3043_v62 = vld [vmem:[%s4300_s7 + $0x80] ss:$8 sps:$4 sm:$0xff]   ;;  %2051 = vmatprep.subr.bf16.mxu0 %v3042_v39 }
 0x1fc   : > { %v1332_v7 = vpack.c.bf16 %v1306_v2, %v1302_v60  ;;  %v1324_v25 = vpack.c.bf16 %v1041_v51, %v1037_v61  ;;  %v3045_v60 = vld [vmem:[%s4300_s7 + $0x84] ss:$8 sps:$4 sm:$0xff]   ;;  %v3040_v61 = vld [vmem:[%s4301_s8 + $0x70] ss:$8 sps:$4 sm:$0xff]   ;;  %v3046_v3 = vld [vmem:[%s4301_s8 + $0x60] ss:$8 sps:$4 sm:$0xff]  }
 0x1fd   : > { %2052 = vmatpush1.bf16.msra.mxu0 %v3040_v61  ;;  %v3048_v2 = vld [vmem:[%s4301_s8 + $0x64] ss:$8 sps:$4 sm:$0xff]   ;;  %v3049_v51 = vld [vmem:[%s4301_s8 + $0x50] ss:$8 sps:$4 sm:$0xff]  }
 0x1fe   : > { %v1310_v4 = vpop.f32.mrf.mxu0  ;;  %v1045_v8 = vpop.f32.mrf.mxu1  ;;  %2053 = vmatprep.subr.bf16.mxu0 %v3048_v2 }
 0x200   : > { %v1312_v59 = vpop.f32.mrf.mxu0  ;;  %v1047_v0 = vpop.f32.mrf.mxu1 }
 0x201   : > { %2054 = vmatpush1.bf16.msra.mxu0 %v3046_v3 }
 0x202   : > { %v1314_v6 = vpop.f32.mrf.mxu0  ;;  %v1049_v17 = vpop.f32.mrf.mxu1 }
 0x203   : > { %v1333_v11 = vpack.c.bf16 %v1314_v6, %v1310_v4  ;;  %v1325_v24 = vpack.c.bf16 %v1049_v17, %v1045_v8  ;;  %v3051_v4 = vld [vmem:[%s4301_s8 + $0x54] ss:$8 sps:$4 sm:$0xff]   ;;  %v3052_v6 = vld [vmem:[%s4301_s8 + $0x40] ss:$8 sps:$4 sm:$0xff]   ;;  %v3069_v17 = vld [vmem:[%s4301_s8 + $0x84] ss:$8 sps:$4 sm:$0xff]  }
 0x204   : > { %v1316_v9 = vpop.f32.mrf.mxu0  ;;  %v1051_v20 = vpop.f32.mrf.mxu1  ;;  %2055 = vmatprep.subr.bf16.mxu0 %v3051_v4  ;;  %v3057_v8 = vld [vmem:[%s4301_s8 + $0x34] ss:$8 sps:$4 sm:$0xff]  }
 0x205   : > { %v1334_v10 = vpack.c.bf16 %v1316_v9, %v1312_v59  ;;  %v1326_v23 = vpack.c.bf16 %v1051_v20, %v1047_v0  ;;  %2056 = vmatpush1.bf16.msra.mxu0 %v3049_v51  ;;  %v3054_v59 = vld [vmem:[%s4301_s8 + $0x44] ss:$8 sps:$4 sm:$0xff]   ;;  %v3055_v9 = vld [vmem:[%s4301_s8 + $0x30] ss:$8 sps:$4 sm:$0xff]   ;;  %v1375_v20 = vpop.permute.xlu1 %1374 }
 0x206   : > { %2057 = vmatprep.subr.bf16.mxu0 %v3054_v59  ;;  %v3061_v0 = vld [vmem:[%s4301_s8 + $0x10] ss:$8 sps:$4 sm:$0xff]  }
 0x207   : > { %1495 = vmatprep.subr.bf16.mxu1 %v1334_v10  ;;  %v3060_v10 = vld [vmem:[%s4301_s8 + $0x24] ss:$8 sps:$4 sm:$0xff]  }
 0x208   : > { %1496 = vmatpush1.bf16.msra.mxu1 %v1333_v11  ;;  %v3058_v11 = vld [vmem:[%s4301_s8 + $0x20] ss:$8 sps:$4 sm:$0xff]  }
 0x209   : > { %1497 = vmatprep.subr.bf16.mxu1 %v1332_v7  ;;  %2058 = vmatpush1.bf16.msra.mxu0 %v3052_v6  ;;  %v3063_v7 = vld [vmem:[%s4301_s8 + $0x14] ss:$8 sps:$4 sm:$0xff]  }
 0x20a   : > { %2059 = vmatprep.subr.bf16.mxu0 %v3057_v8 }
 0x20c   : > { %1498 = vmatpush1.bf16.msra.mxu1 %v1331_v12  ;;  %v3066_v12 = vld [vmem:[%s4301_s8 + $0x4] ss:$8 sps:$4 sm:$0xff]  }
 0x20d   : > { %1499 = vmatprep.subr.bf16.mxu1 %v1330_v13  ;;  %2060 = vmatpush1.bf16.msra.mxu0 %v3055_v9  ;;  %v3064_v13 = vld [vmem:[%s4301_s8] ss:$8 sps:$4 sm:$0xff]  }
 0x20e   : > { %2061 = vmatprep.subr.bf16.mxu0 %v3060_v10 }
 0x210   : > { %1500 = vmatpush1.bf16.msra.mxu1 %v1329_v18  ;;  %v3067_v18 = vld [vmem:[%s4301_s8 + $0x80] ss:$8 sps:$4 sm:$0xff]  }
 0x211   : > { %1501 = vmatprep.subr.bf16.mxu1 %v1328_v19  ;;  %2062 = vmatpush1.bf16.msra.mxu0 %v3058_v11  ;;  %v1370_v19 = vpop.permute.xlu0 %1369 }
 0x212   : > { %2063 = vmatprep.subr.bf16.mxu0 %v3063_v7 }
 0x214   : > { %1502 = vmatpush1.bf16.msra.mxu1 %v1327_v22 }
 0x215   : > { %1503 = vmatprep.subr.bf16.mxu1 %v1326_v23  ;;  %2064 = vmatpush1.bf16.msra.mxu0 %v3061_v0  ;;  %v3942_v22 = vpop.permute.xlu0 %1409  ;;  %v3944_v23 = vpop.permute.xlu1 %1414 }
 0x216   : > { %2065 = vmatprep.subr.bf16.mxu0 %v3066_v12 }
 0x218   : > { %1504 = vmatpush1.bf16.msra.mxu1 %v1325_v24 }
 0x219   : > { %1505 = vmatprep.subr.bf16.mxu1 %v1324_v25  ;;  %2066 = vmatpush1.bf16.msra.mxu0 %v3064_v13  ;;  %v1380_v24 = vpop.permute.xlu0 %1379 }
 0x21a   : > { %2081 = vmatprep.subr.bf16.mxu0 %v3069_v17 }
 0x21c   : > { %1506 = vmatpush1.bf16.msra.mxu1 %v1323_v26 }
 0x21d   : > { %1507 = vmatprep.subr.bf16.mxu1 %v1322_v29  ;;  %2082 = vmatpush2.bf16.msra.mxu0 %v3067_v18 }
 0x220   : > { %1508 = vmatpush1.bf16.msra.mxu1 %v1321_v31 }
 0x221   : > { %1509 = vmatprep.subr.bf16.mxu1 %v1320_v34 }
 0x224   : > { %1510 = vmatpush1.bf16.msra.mxu1 %v1319_v27  ;;  %v1385_v27 = vpop.permute.xlu1 %1384 }
 0x225   : > { %2226 = vmatprep.subr.bf16.mxu1 %v3018_v63 }
 0x227   : > { %1528 = vmatmul.mubr.bf16.vlgmr.msra.gmra.mxu1 %v3008_v32 }
 0x228   : > { %1537 = vmatprep.mubr.bf16.mxu1 %v3278_v1  ;;  %2227 = vmatpush1.bf16.msra.mxu1 %v3016_v41 }
 0x229   : > { %2228 = vmatprep.subr.bf16.mxu1 %v3021_v42 }
 0x22c   : > { %2229 = vmatpush1.bf16.msra.mxu1 %v3019_v21 }
 0x22d   : > { %2230 = vmatprep.subr.bf16.mxu1 %v3024_v43 }
 0x22f   : > { %1538 = vmatmul.mubr.bf16.gmra.mxu1 %v3009_v33 }
 0x230   : > { %1547 = vmatprep.mubr.bf16.mxu1 %v3278_v1  ;;  %2231 = vmatpush1.bf16.msra.mxu1 %v3022_v45  ;;  %v3962_v45 = vpop.permute.xlu1 %1424 }
 0x231   : > { %2232 = vmatprep.subr.bf16.mxu1 %v3027_v46 }
 0x234   : > { %2233 = vmatpush1.bf16.msra.mxu1 %v3025_v30 }
 0x235   : > { %2234 = vmatprep.subr.bf16.mxu1 %v3030_v48 }
 0x237   : > { %1548 = vmatmul.mubr.bf16.gmra.mxu1 %v3010_v35 }
 0x238   : > { %1557 = vmatprep.mubr.bf16.mxu1 %v3278_v1  ;;  %2235 = vmatpush1.bf16.msra.mxu1 %v3028_v49 }
 0x239   : > { %2236 = vmatprep.subr.bf16.mxu1 %v3033_v52 }
 0x23c   : > { %2237 = vmatpush1.bf16.msra.mxu1 %v3031_v53 }
 0x23d   : > { %2238 = vmatprep.subr.bf16.mxu1 %v3036_v55 }
 0x23f   : > { %1558 = vmatmul.mubr.bf16.gmra.mxu1 %v3011_v54 }
 0x240   : > { %1567 = vmatprep.mubr.bf16.mxu1 %v3278_v1  ;;  %2239 = vmatpush1.bf16.msra.mxu1 %v3034_v56 }
 0x241   : > { %2240 = vmatprep.subr.bf16.mxu1 %v3039_v57 }
 0x244   : > { %2241 = vmatpush1.bf16.msra.mxu1 %v3037_v58 }
 0x245   : > { %2256 = vmatprep.subr.bf16.mxu1 %v3045_v60 }
 0x247   : > { %1568 = vmatmul.mubr.bf16.gmra.mxu1 %v3012_v44  ;;  %v3954_v44 = vpop.permute.xlu0 %1419 }
 0x248   : > { %1577 = vmatprep.mubr.bf16.mxu1 %v3278_v1  ;;  %2257 = vmatpush2.bf16.msra.mxu1 %v3043_v62  ;;  %v1395_v62 = vpop.permute.xlu1 %1394 }
 0x24b   : > { %v1390_v52 = vpop.permute.xlu0 %1389 }
 0x24c   : > { %v3982_v18 = vpop.permute.xlu1 %1434 }
 0x24f   : > { %1578 = vmatmul.mubr.bf16.gmra.mxu1 %v3013_v37  ;;  %v3976_v59 = vpop.permute.xlu0 %1429 }
 0x250   : > { %1587 = vmatprep.mubr.bf16.mxu1 %v3278_v1 }
 0x257   : > { %1588 = vmatmul.mubr.bf16.gmra.mxu1 %v3014_v40 }
 0x258   : > { %1597 = vmatprep.mubr.bf16.mxu1 %v3278_v1 }
 0x25f   : > { %1598 = vmatmul.mubr.bf16.gmra.mxu1 %v3015_v16 }
 0x2e7   : > { %v1529_v25 = vpop.f32.mrf.mxu1 }
 0x2e8   : > { %v3946_v26 = vadd.f32 %v1529_v25, %v1370_v19 }
 0x2e9   : > { %v1531_v29 = vpop.f32.mrf.mxu1 }
 0x2ea   : > { %v1608_v31 = vsub.f32 0.0, %v3946_v26  ;;  %v3949_v34 = vadd.f32 %v1531_v29, %v1370_v19 }
 0x2eb   : > { %v1533_v32 = vpop.f32.mrf.mxu1 }
 0x2ec   : > { %v1640_v33 = vmul.f32 1.442695, %v1608_v31  ;;  %v1609_v35 = vsub.f32 0.0, %v3949_v34  ;;  %v3952_v54 = vadd.f32 %v1533_v32, %v1375_v20 }
 0x2ed   : > { %v1535_v37 = vpop.f32.mrf.mxu1 }
 0x2ee   : > { %3142 = vpow2.f32 %v1640_v33  ;;  %v1642_v40 = vmul.f32 1.442695, %v1609_v35  ;;  %v1610_v16 = vsub.f32 0.0, %v3952_v54  ;;  %v3957_v63 = vadd.f32 %v1535_v37, %v1375_v20 }
 0x2ef   : > { %v1539_v41 = vpop.f32.mrf.mxu1 }
 0x2f0   : > { %3144 = vpow2.f32 %v1642_v40  ;;  %v1644_v42 = vmul.f32 1.442695, %v1610_v16  ;;  %v1611_v21 = vsub.f32 0.0, %v3957_v63  ;;  %v3960_v43 = vadd.f32 %v1539_v41, %v1380_v24 }
 0x2f1   : > { %v1541_v46 = vpop.f32.mrf.mxu1 }
 0x2f2   : > { %3146 = vpow2.f32 %v1644_v42  ;;  %v1646_v30 = vmul.f32 1.442695, %v1611_v21  ;;  %v1612_v48 = vsub.f32 0.0, %v3960_v43  ;;  %v3965_v49 = vadd.f32 %v1541_v46, %v1380_v24 }
 0x2f3   : > { %v1543_v53 = vpop.f32.mrf.mxu1 }
 0x2f4   : > { %3148 = vpow2.f32 %v1646_v30  ;;  %v1648_v55 = vmul.f32 1.442695, %v1612_v48  ;;  %v1613_v56 = vsub.f32 0.0, %v3965_v49  ;;  %v3968_v57 = vadd.f32 %v1543_v53, %v1385_v27 }
 0x2f5   : > { %v1545_v58 = vpop.f32.mrf.mxu1 }
 0x2f6   : > { %3150 = vpow2.f32 %v1648_v55  ;;  %v1650_v39 = vmul.f32 1.442695, %v1613_v56  ;;  %v1614_v60 = vsub.f32 0.0, %v3968_v57  ;;  %v3971_v61 = vadd.f32 %v1545_v58, %v1385_v27  ;;  %v1400_v27 = vpop.permute.xlu0 %1399 }
 0x2f7   : > { %v1549_v2 = vpop.f32.mrf.mxu1 }
 0x2f8   : > { %3152 = vpow2.f32 %v1650_v39  ;;  %v1652_v3 = vmul.f32 1.442695, %v1614_v60  ;;  %v1615_v4 = vsub.f32 0.0, %v3971_v61  ;;  %v3974_v51 = vadd.f32 %v1549_v2, %v1390_v52 }
 0x2f9   : > { %v1551_v6 = vpop.f32.mrf.mxu1 }
 0x2fa   : > { %v1654_v8 = vmul.f32 1.442695, %v1615_v4  ;;  %v1616_v9 = vsub.f32 0.0, %v3974_v51  ;;  %v3979_v10 = vadd.f32 %v1551_v6, %v1390_v52  ;;  %3154 = vpow2.f32 %v1652_v3  ;;  %v1405_v52 = vpop.permute.xlu1 %1404 }
 0x2fb   : > { %v3143_v11 = vpop.eup %3142  ;;  %v1553_v7 = vpop.f32.mrf.mxu1 }
 0x2fc   : > { %v1704_v0 = vadd.f32 1.0, %v3143_v11  ;;  %3156 = vpow2.f32 %v1654_v8  ;;  %v1656_v12 = vmul.f32 1.442695, %v1616_v9  ;;  %v1617_v13 = vsub.f32 0.0, %v3979_v10 }
 0x2fd   : > { %v3145_v17 = vpop.eup %3144  ;;  %v3984_v19 = vadd.f32 %v1553_v7, %v1395_v62  ;;  %v1555_v20 = vpop.f32.mrf.mxu1 }
 0x2fe   : > { %3158 = vrcp.f32 %v1704_v0  ;;  %v1705_v24 = vadd.f32 1.0, %v3145_v17  ;;  %v1658_v25 = vmul.f32 1.442695, %v1617_v13  ;;  %v3986_v29 = vadd.f32 %v1555_v20, %v1395_v62 }
 0x2ff   : > { %v3147_v31 = vpop.eup %3146  ;;  %3160 = vpow2.f32 %v1656_v12  ;;  %v1618_v32 = vsub.f32 0.0, %v3984_v19  ;;  %v1559_v33 = vpop.f32.mrf.mxu1 }
 0x300   : > { %3162 = vrcp.f32 %v1705_v24  ;;  %v1706_v35 = vadd.f32 1.0, %v3147_v31  ;;  %v1619_v37 = vsub.f32 0.0, %v3986_v29  ;;  %v3990_v40 = vadd.f32 %v1559_v33, %v1400_v27 }
 0x301   : > { %v3149_v16 = vpop.eup %3148  ;;  %3164 = vpow2.f32 %v1658_v25  ;;  %v1660_v41 = vmul.f32 1.442695, %v1618_v32  ;;  %v1561_v42 = vpop.f32.mrf.mxu1 }
 0x302   : > { %3166 = vrcp.f32 %v1706_v35  ;;  %v1707_v21 = vadd.f32 1.0, %v3149_v16  ;;  %v1662_v46 = vmul.f32 1.442695, %v1619_v37  ;;  %v1620_v30 = vsub.f32 0.0, %v3990_v40 }
 0x303   : > { %v3151_v48 = vpop.eup %3150  ;;  %3168 = vpow2.f32 %v1660_v41  ;;  %v3993_v53 = vadd.f32 %v1561_v42, %v1400_v27  ;;  %v1563_v55 = vpop.f32.mrf.mxu1 }
 0x304   : > { %3170 = vrcp.f32 %v1707_v21  ;;  %v1708_v56 = vadd.f32 1.0, %v3151_v48  ;;  %v1664_v58 = vmul.f32 1.442695, %v1620_v30  ;;  %v3995_v39 = vadd.f32 %v1563_v55, %v1405_v52 }
 0x305   : > { %v3153_v60 = vpop.eup %3152  ;;  %3172 = vpow2.f32 %v1662_v46  ;;  %v1621_v62 = vsub.f32 0.0, %v3993_v53  ;;  %v1565_v2 = vpop.f32.mrf.mxu1 }
 0x306   : > { %v3998_v3 = vadd.f32 %v1565_v2, %v1405_v52  ;;  %v1709_v4 = vadd.f32 1.0, %v3153_v60  ;;  %3174 = vpow2.f32 %v1664_v58  ;;  %v1622_v8 = vsub.f32 0.0, %v3995_v39 }
 0x307   : > { %v1666_v6 = vmul.f32 1.442695, %v1621_v62  ;;  %v1569_v9 = vpop.f32.mrf.mxu1  ;;  %v3155_v11 = vpop.eup %3154  ;;  %3176 = vrcp.f32 %v1708_v56 }
 0x308   : > { %v1623_v7 = vsub.f32 0.0, %v3998_v3  ;;  %v4003_v20 = vadd.f32 %v1569_v9, %v3942_v22  ;;  %v1668_v25 = vmul.f32 1.442695, %v1622_v8  ;;  %v1710_v32 = vadd.f32 1.0, %v3155_v11 }
 0x309   : > { %v3157_v0 = vpop.eup %3156  ;;  %3178 = vpow2.f32 %v1666_v6  ;;  %v1571_v12 = vpop.f32.mrf.mxu1 }
 0x30a   : > { %v1711_v13 = vadd.f32 1.0, %v3157_v0  ;;  %v1670_v17 = vmul.f32 1.442695, %v1623_v7  ;;  %3180 = vrcp.f32 %v1709_v4  ;;  %v4006_v33 = vadd.f32 %v1571_v12, %v3942_v22 }
 0x30b   : > { %v3159_v24 = vpop.eup %3158  ;;  %v1573_v31 = vpop.f32.mrf.mxu1  ;;  %v1624_v41 = vsub.f32 0.0, %v4003_v20 }
 0x30c   : > { %v3161_v27 = vpop.eup %3160  ;;  %3182 = vrcp.f32 %v1711_v13  ;;  %v1768_v21 = vmul.f32 %v3159_v24, %v3946_v26  ;;  %v1625_v22 = vsub.f32 0.0, %v4006_v33  ;;  %v4014_v60 = vadd.f32 %v1573_v31, %v3944_v23 }
 0x30d   : > { %v3163_v35 = vpop.eup %3162  ;;  %3184 = vpow2.f32 %v1670_v17  ;;  %v1575_v37 = vpop.f32.mrf.mxu1  ;;  %v1712_v55 = vadd.f32 1.0, %v3161_v27  ;;  %v1672_v6 = vmul.f32 1.442695, %v1624_v41 }
 0x30e   : > { %v3165_v16 = vpop.eup %3164  ;;  %3186 = vpow2.f32 %v1668_v25  ;;  %v1769_v58 = vmul.f32 %v3163_v35, %v3949_v34  ;;  %v4018_v8 = vadd.f32 %v1575_v37, %v3944_v23  ;;  %vm1800_vm0 = vcmp.ge.f32.partialorder %v1768_v21, 0.0 }
 0x30f   : > { %v3167_v42 = vpop.eup %3166  ;;  %v1713_v46 = vadd.f32 1.0, %v3165_v16  ;;  %v1579_v30 = vpop.f32.mrf.mxu1  ;;  %3188 = vrcp.f32 %v1710_v32  ;;  %v1674_v34 = vmul.f32 1.442695, %v1625_v22  ;;  %v1626_v17 = vsub.f32 0.0, %v4014_v60 }
 0x310   : > { %v3169_v48 = vpop.eup %3168  ;;  %v1770_v52 = vmul.f32 %v3167_v42, %v3952_v54  ;;  %v1832_v54 = vmul.f32 0.2, %v1768_v21  ;;  %v4021_v12 = vadd.f32 %v1579_v30, %v3954_v44  ;;  %vm1801_vm2 = vcmp.ge.f32.partialorder %v1769_v58, 0.0 }
 0x311   : > { %v3171_v56 = vpop.eup %3170  ;;  %3190 = vrcp.f32 %v1713_v46  ;;  %v1581_v62 = vpop.f32.mrf.mxu1  ;;  %v1714_v4 = vadd.f32 1.0, %v3169_v48  ;;  %v1627_v27 = vsub.f32 0.0, %v4018_v8 }
 0x312   : > { %v3173_v2 = vpop.eup %3172  ;;  %v1771_v26 = vmul.f32 %v3171_v56, %v3957_v63  ;;  %v1834_v9 = vmul.f32 0.2, %v1770_v52  ;;  %vm1802_vm1 = vcmp.ge.f32.partialorder %v1770_v52, 0.0  ;;  %3192 = vrcp.f32 %v1712_v55 }
 0x313   : > { %v1715_v11 = vadd.f32 1.0, %v3173_v2  ;;  %v1583_v7 = vpop.f32.mrf.mxu1  ;;  %v3175_v0 = vpop.eup %3174  ;;  %v1833_v63 = vmul.f32 0.2, %v1769_v58  ;;  %v4028_v37 = vadd.f32 %v1581_v62, %v3954_v44  ;;  %v4031_v42 = vsel %vm1800_vm0, %v1768_v21, %v1832_v54 }
 0x314   : > { %v3177_v13 = vpop.eup %3176  ;;  %v1835_v25 = vmul.f32 0.2, %v1771_v26  ;;  %v1716_v31 = vadd.f32 1.0, %v3175_v0  ;;  %v4025_v32 = vsel %vm1802_vm1, %v1770_v52, %v1834_v9  ;;  %vm1803_vm3 = vcmp.ge.f32.partialorder %v1771_v26, 0.0 }
 0x315   : > { %3194 = vrcp.f32 %v1715_v11  ;;  %v1585_v23 = vpop.f32.mrf.mxu1  ;;  %v4034_v46 = vmul.f32 %v3177_v13, %v3960_v43  ;;  %v1628_v30 = vsub.f32 0.0, %v4021_v12  ;;  %v1865_v52 = vsel %vm1801_vm2, %v1769_v58, %v1833_v63 }
 0x316   : > { %v3179_v24 = vpop.eup %3178  ;;  %3196 = vrcp.f32 %v1714_v4  ;;  %v1676_v55 = vmul.f32 1.442695, %v1626_v17  ;;  %v1629_v22 = vsub.f32 0.0, %v4028_v37  ;;  %v4040_v44 = vadd.f32 %v1583_v7, %v3962_v45 }
 0x317   : > { %v1717_v35 = vadd.f32 1.0, %v3179_v24  ;;  %v1589_v16 = vpop.f32.mrf.mxu1  ;;  %v3181_v41 = vpop.eup %3180  ;;  %3198 = vpow2.f32 %v1672_v6  ;;  %v1896_v21 = vpack.c.bf16 %v4025_v32, %v4031_v42  ;;  %v1867_v43 = vsel %vm1803_vm3, %v1771_v26, %v1835_v25 }
 0x318   : > { %3200 = vrcp.f32 %v1716_v31  ;;  %v1678_v2 = vmul.f32 1.442695, %v1627_v27  ;;  %v1773_v4 = vmul.f32 %v3181_v41, %v3965_v49  ;;  %v1630_v6 = vsub.f32 0.0, %v4040_v44 }
 0x319   : > { %v3183_v48 = vpop.eup %3182  ;;  %v1591_v56 = vpop.f32.mrf.mxu1  ;;  %3202 = vrcp.f32 %v1717_v35  ;;  %v4048_v11 = vmul.f32 0.2, %v4034_v46  ;;  %v1680_v7 = vmul.f32 1.442695, %v1628_v30  ;;  %v4051_v0 = vadd.f32 %v1585_v23, %v3962_v45 }
 0x31a   : > { %v3185_v62 = vpop.eup %3184  ;;  %3204 = vpow2.f32 %v1674_v34  ;;  %v1775_v26 = vmul.f32 %v3183_v48, %v3971_v61  ;;  %v1682_v63 = vmul.f32 1.442695, %v1629_v22  ;;  %v4055_v49 = vadd.f32 %v1589_v16, %v3976_v59 }
 0x31b   : > { %v1719_v58 = vadd.f32 1.0, %v3185_v62  ;;  %v1593_v54 = vpop.f32.mrf.mxu1  ;;  %v3187_v9 = vpop.eup %3186  ;;  %v1684_v25 = vmul.f32 1.442695, %v1630_v6  ;;  %v1631_v31 = vsub.f32 0.0, %v4051_v0  ;;  %v4059_v34 = vadd.f32 %v1591_v56, %v3976_v59 }
 0x31c   : > { %v3189_v13 = vpop.eup %3188  ;;  %vm1805_vm5 = vcmp.ge.f32.partialorder %v1773_v4, 0.0  ;;  %v1837_v45 = vmul.f32 0.2, %v1773_v4  ;;  %v1718_v23 = vadd.f32 1.0, %v3187_v9  ;;  %v1632_v27 = vsub.f32 0.0, %v4055_v49  ;;  %v1440_v56 = vpop.permute.xlu0 %1439 }
 0x31d   : > { %3206 = vrcp.f32 %v1719_v58  ;;  %v1595_v17 = vpop.f32.mrf.mxu1  ;;  %v1686_v61 = vmul.f32 1.442695, %v1631_v31  ;;  %v1633_v32 = vsub.f32 0.0, %v4059_v34  ;;  %v4064_v16 = vmul.f32 %v3189_v13, %v3968_v57 }
 0x31e   : > { %v3191_v24 = vpop.eup %3190  ;;  %3208 = vpow2.f32 %v1676_v55  ;;  %v1839_v41 = vmul.f32 0.2, %v1775_v26  ;;  %vm1804_vm6 = vcmp.ge.f32.partialorder %v4034_v46, 0.0  ;;  %vm1807_vm7 = vcmp.ge.f32.partialorder %v1775_v26, 0.0 }
 0x31f   : > { %3210 = vpow2.f32 %v1678_v2  ;;  %v3193_v35 = vpop.eup %3192  ;;  %v1777_v42 = vmul.f32 %v3191_v24, %v3979_v10  ;;  %v1599_v59 = vpop.f32.mrf.mxu1  ;;  %v1690_v48 = vmul.f32 1.442695, %v1633_v32  ;;  %v1897_v55 = vpack.c.bf16 %v1867_v43, %v1865_v52 }
 0x320   : > { %3212 = vpow2.f32 %v1680_v7  ;;  %v1869_v62 = vsel %vm1805_vm5, %v1773_v4, %v1837_v45  ;;  %v1688_v57 = vmul.f32 1.442695, %v1632_v27  ;;  %v4072_v10 = vadd.f32 %v1593_v54, %v3982_v18 }
 0x321   : > { %3214 = vpow2.f32 %v1682_v63  ;;  %2857 = vmatprep.mubr.msk.bf16.mxu1 %vm2038_vm4, %v1897_v55  ;;  %v4075_v58 = vadd.f32 %v1595_v17, %v3982_v18  ;;  %v4077_v6 = vadd.f32 %v1599_v59, %v1440_v56  ;;  %vm1806_vm8 = vcmp.ge.f32.partialorder %v4064_v16, 0.0  ;;  %v1601_v9 = vpop.f32.mrf.mxu1 }
 0x322   : > { %v3195_v30 = vpop.eup %3194  ;;  %3216 = vpow2.f32 %v1684_v25  ;;  %v1871_v43 = vsel %vm1807_vm7, %v1775_v26, %v1839_v41  ;;  %v1841_v4 = vmul.f32 0.2, %v1777_v42  ;;  %2259 = vmatmul.mubr.bf16.vlgmr.msra.gmra.mxu1 %v1896_v21  ;;  %v1634_v54 = vsub.f32 0.0, %v4072_v10 }
 0x323   : > { %v3197_v22 = vpop.eup %3196  ;;  %v1779_v2 = vmul.f32 %v3195_v30, %v3986_v29  ;;  %3218 = vrcp.f32 %v1718_v23  ;;  %v4082_v29 = vmul.f32 %v3193_v35, %v3974_v51  ;;  %v1635_v18 = vsub.f32 0.0, %v4075_v58 }
 0x324   : > { %3220 = vpow2.f32 %v1686_v61  ;;  %v3199_v52 = vpop.eup %3198  ;;  %vm1809_vm9 = vcmp.ge.f32.partialorder %v1777_v42, 0.0  ;;  %v4089_v63 = vmul.f32 %v3197_v22, %v3984_v19  ;;  %v1838_v51 = vmul.f32 0.2, %v4064_v16  ;;  %v1603_v61 = vpop.f32.mrf.mxu1 }
 0x325   : > { %v1720_v7 = vadd.f32 1.0, %v3199_v52  ;;  %3222 = vpow2.f32 %v1690_v48  ;;  %v4086_v13 = vpop.eup %3200  ;;  %v1843_v17 = vmul.f32 0.2, %v1779_v2  ;;  %vm1811_vm10 = vcmp.ge.f32.partialorder %v1779_v2, 0.0 }
 0x326   : > { %3224 = vpow2.f32 %v1688_v57  ;;  %v3203_v26 = vpop.eup %3202  ;;  %v1692_v21 = vmul.f32 1.442695, %v1634_v54  ;;  %v1636_v24 = vsub.f32 0.0, %v4077_v6  ;;  %v4094_v31 = vmul.f32 0.2, %v4082_v29 }
 0x327   : > { %v3205_v25 = vpop.eup %3204  ;;  %3226 = vrcp.f32 %v1720_v7  ;;  %v1694_v45 = vmul.f32 1.442695, %v1635_v18  ;;  %v4096_v23 = vadd.f32 %v1601_v9, %v1440_v56  ;;  %v1873_v27 = vsel %vm1809_vm9, %v1777_v42, %v1841_v4  ;;  %v1445_v7 = vpop.permute.xlu1 %1444 }
 0x328   : > { %v1721_v32 = vadd.f32 1.0, %v3205_v25  ;;  %3228 = vpow2.f32 %v1692_v21  ;;  %v1899_v35 = vpack.c.bf16 %v1871_v43, %v1869_v62  ;;  %vm1808_vm11 = vcmp.ge.f32.partialorder %v4082_v29, 0.0  ;;  %v1605_v43 = vpop.f32.mrf.mxu1 }
 0x329   : > { %vm1810_vm12 = vcmp.ge.f32.partialorder %v4089_v63, 0.0  ;;  %v1842_v59 = vmul.f32 0.2, %v4089_v63  ;;  %v1875_v30 = vsel %vm1811_vm10, %v1779_v2, %v1843_v17  ;;  %v1781_v22 = vmul.f32 %v3203_v26, %v3993_v53 }
 0x32a   : > { %v3207_v19 = vpop.eup %3206  ;;  %3230 = vrcp.f32 %v1721_v32  ;;  %v1696_v42 = vmul.f32 1.442695, %v1636_v24  ;;  %2858 = vmatprep.mubr.msk.bf16.mxu1 %vm2038_vm4, %v1899_v35  ;;  %v1637_v52 = vsub.f32 0.0, %v4096_v23  ;;  %v1868_v2 = vsel %vm1804_vm6, %v4034_v46, %v4048_v11 }
 0x32b   : > { %v3209_v41 = vpop.eup %3208  ;;  %v1783_v48 = vmul.f32 %v3207_v19, %v3998_v3  ;;  %3232 = vpow2.f32 %v1694_v45  ;;  %v1870_v4 = vsel %vm1806_vm8, %v4064_v16, %v1838_v51  ;;  %v4114_v24 = vadd.f32 %v1603_v61, %v1445_v7 }
 0x32c   : > { %v3211_v55 = vpop.eup %3210  ;;  %v1722_v56 = vadd.f32 1.0, %v3209_v41  ;;  %v1898_v17 = vpack.c.bf16 %v1870_v4, %v1868_v2  ;;  %v4116_v46 = vadd.f32 %v1605_v43, %v1445_v7  ;;  %vm1813_vm14 = vcmp.ge.f32.partialorder %v1781_v22, 0.0 }
 0x32d   : > { %v3213_v62 = vpop.eup %3212  ;;  %v1723_v57 = vadd.f32 1.0, %v3211_v55  ;;  %vm1815_vm13 = vcmp.ge.f32.partialorder %v1783_v48, 0.0  ;;  %v1847_v54 = vmul.f32 0.2, %v1783_v48  ;;  %v1845_v25 = vmul.f32 0.2, %v1781_v22 }
 0x32e   : > { %v3215_v3 = vpop.eup %3214  ;;  %3234 = vrcp.f32 %v1722_v56  ;;  %v1724_v53 = vadd.f32 1.0, %v3213_v62  ;;  %2269 = vmatmul.mubr.bf16.gmra.mxu1 %v1898_v17  ;;  %v1901_v45 = vpack.c.bf16 %v1875_v30, %v1873_v27  ;;  %v1638_v51 = vsub.f32 0.0, %v4114_v24 }
 0x32f   : > { %v3217_v9 = vpop.eup %3216  ;;  %3236 = vrcp.f32 %v1723_v57  ;;  %v1725_v18 = vadd.f32 1.0, %v3215_v3  ;;  %v1639_v19 = vsub.f32 0.0, %v4116_v46  ;;  %v1879_v61 = vsel %vm1815_vm13, %v1783_v48, %v1847_v54 }
 0x330   : > { %v3219_v26 = vpop.eup %3218  ;;  %3238 = vrcp.f32 %v1724_v53  ;;  %v1726_v21 = vadd.f32 1.0, %v3217_v9  ;;  %v1698_v41 = vmul.f32 1.442695, %v1637_v52  ;;  %2859 = vmatprep.mubr.msk.bf16.mxu1 %vm2038_vm4, %v1901_v45  ;;  %v1700_v62 = vmul.f32 1.442695, %v1638_v51 }
 0x331   : > { %v3221_v11 = vpop.eup %3220  ;;  %3240 = vrcp.f32 %v1725_v18  ;;  %v1782_v35 = vmul.f32 %v3219_v26, %v3995_v39  ;;  %v1874_v27 = vsel %vm1810_vm12, %v4089_v63, %v1842_v59  ;;  %v1780_v30 = vmul.f32 %v4086_v13, %v3990_v40 }
 0x332   : > { %3242 = vrcp.f32 %v1726_v21  ;;  %v1727_v16 = vadd.f32 1.0, %v3221_v11  ;;  %v3223_v32 = vpop.eup %3222  ;;  %v1877_v57 = vsel %vm1813_vm14, %v1781_v22, %v1845_v25  ;;  %v1702_v39 = vmul.f32 1.442695, %v1639_v19 }
 0x333   : > { %3244 = vpow2.f32 %v1696_v42  ;;  %v3225_v55 = vpop.eup %3224  ;;  %v1729_v56 = vadd.f32 1.0, %v3223_v32  ;;  %v1872_v48 = vsel %vm1808_vm11, %v4082_v29, %v4094_v31  ;;  %v1903_v42 = vpack.c.bf16 %v1879_v61, %v1877_v57 }
 0x334   : > { %3246 = vrcp.f32 %v1727_v16  ;;  %v3227_v2 = vpop.eup %3226  ;;  %v1846_v43 = vmul.f32 0.2, %v1782_v35  ;;  %v1728_v3 = vadd.f32 1.0, %v3225_v55  ;;  %v1900_v53 = vpack.c.bf16 %v1874_v27, %v1872_v48 }
 0x335   : > { %3248 = vrcp.f32 %v1729_v56  ;;  %v3229_v52 = vpop.eup %3228  ;;  %vm1814_vm15 = vcmp.ge.f32.partialorder %v1782_v35, 0.0  ;;  %v1844_v13 = vmul.f32 0.2, %v1780_v30  ;;  %v1784_v59 = vmul.f32 %v3227_v2, %v4003_v20 }
 0x336   : > { %3250 = vpow2.f32 %v1698_v41  ;;  %v1730_v63 = vadd.f32 1.0, %v3229_v52  ;;  %2279 = vmatmul.mubr.bf16.gmra.mxu1 %v1900_v53  ;;  %vm1812_vm0 = vcmp.ge.f32.partialorder %v1780_v30, 0.0  ;;  %v1878_v9 = vsel %vm1814_vm15, %v1782_v35, %v1846_v43 }
 0x337   : > { %3252 = vpow2.f32 %v1700_v62  ;;  %v3231_v40 = vpop.eup %3230  ;;  %2860 = vmatprep.mubr.msk.bf16.mxu1 %vm2038_vm4, %v1903_v42  ;;  %v1848_v17 = vmul.f32 0.2, %v1784_v59  ;;  %v1876_v26 = vsel %vm1812_vm0, %v1780_v30, %v1844_v13  ;;  %vm1816_vm5 = vcmp.ge.f32.partialorder %v1784_v59, 0.0 }
 0x338   : > { %3254 = vpow2.f32 %v1702_v39  ;;  %v3233_v22 = vpop.eup %3232  ;;  %v1785_v4 = vmul.f32 %v3231_v40, %v4006_v33  ;;  %v1902_v25 = vpack.c.bf16 %v1878_v9, %v1876_v26 }
 0x339   : > { %3256 = vrcp.f32 %v1730_v63  ;;  %v1731_v31 = vadd.f32 1.0, %v3233_v22  ;;  %v1880_v30 = vsel %vm1816_vm5, %v1784_v59, %v1848_v17 }
 0x33a   : > { %3258 = vrcp.f32 %v1728_v3  ;;  %v1849_v11 = vmul.f32 0.2, %v1785_v4  ;;  %vm1817_vm2 = vcmp.ge.f32.partialorder %v1785_v4, 0.0 }
 0x33b   : > { %v3235_v29 = vpop.eup %3234  ;;  %3260 = vrcp.f32 %v1731_v31 }
 0x33c   : > { %v3237_v7 = vpop.eup %3236  ;;  %v1786_v54 = vmul.f32 %v3235_v29, %v4014_v60  ;;  %v1881_v41 = vsel %vm1817_vm2, %v1785_v4, %v1849_v11 }
 0x33d   : > { %v3239_v18 = vpop.eup %3238  ;;  %v1787_v20 = vmul.f32 %v3237_v7, %v4018_v8 }
 0x33e   : > { %v3241_v21 = vpop.eup %3240  ;;  %vm1818_vm1 = vcmp.ge.f32.partialorder %v1786_v54, 0.0  ;;  %v1850_v33 = vmul.f32 0.2, %v1786_v54  ;;  %v1788_v8 = vmul.f32 %v3239_v18, %v4021_v12  ;;  %2289 = vmatmul.mubr.bf16.gmra.mxu1 %v1902_v25 }
 0x33f   : > { %v3243_v45 = vpop.eup %3242  ;;  %vm1819_vm3 = vcmp.ge.f32.partialorder %v1787_v20, 0.0  ;;  %v1851_v16 = vmul.f32 0.2, %v1787_v20  ;;  %v1789_v51 = vmul.f32 %v3241_v21, %v4028_v37  ;;  %2616 = vmatprep.mubr.bf16.mxu1 %v3278_v1 }
 0x340   : > { %v3245_v19 = vpop.eup %3244  ;;  %v1882_v32 = vsel %vm1818_vm1, %v1786_v54, %v1850_v33  ;;  %v1790_v61 = vmul.f32 %v3243_v45, %v4040_v44  ;;  %v1852_v48 = vmul.f32 0.2, %v1788_v8  ;;  %vm1820_vm9 = vcmp.ge.f32.partialorder %v1788_v8, 0.0 }
 0x341   : > { %v3247_v60 = vpop.eup %3246  ;;  %v1883_v35 = vsel %vm1819_vm3, %v1787_v20, %v1851_v16  ;;  %v1853_v55 = vmul.f32 0.2, %v1789_v51  ;;  %v1732_v62 = vadd.f32 1.0, %v3245_v19  ;;  %vm1821_vm6 = vcmp.ge.f32.partialorder %v1789_v51, 0.0 }
 0x342   : > { %v1791_v56 = vmul.f32 %v3247_v60, %v4051_v0  ;;  %v3249_v27 = vpop.eup %3248  ;;  %v1905_v37 = vpack.c.bf16 %v1883_v35, %v1881_v41  ;;  %v1904_v39 = vpack.c.bf16 %v1882_v32, %v1880_v30  ;;  %v1854_v44 = vmul.f32 0.2, %v1790_v61 }
 0x343   : > { %v3251_v57 = vpop.eup %3250  ;;  %3262 = vrcp.f32 %v1732_v62  ;;  %v1885_v0 = vsel %vm1821_vm6, %v1789_v51, %v1853_v55  ;;  %vm1822_vm8 = vcmp.ge.f32.partialorder %v1790_v61, 0.0  ;;  %v1793_v63 = vmul.f32 %v3249_v27, %v4059_v34 }
 0x344   : > { %vm1823_vm7 = vcmp.ge.f32.partialorder %v1791_v56, 0.0  ;;  %v1855_v2 = vmul.f32 0.2, %v1791_v56  ;;  %v3253_v12 = vpop.eup %3252  ;;  %v1733_v42 = vadd.f32 1.0, %v3251_v57  ;;  %2835 = vmatprep.mubr.msk.bf16.mxu0 %vm2038_vm4, %v1905_v37  ;;  %v1886_v4 = vsel %vm1822_vm8, %v1790_v61, %v1854_v44 }
 0x345   : > { %v3255_v52 = vpop.eup %3254  ;;  %v1734_v3 = vadd.f32 1.0, %v3253_v12  ;;  %2084 = vmatmul.mubr.bf16.vlgmr.msra.gmra.mxu0 %v1904_v39  ;;  %v1857_v9 = vmul.f32 0.2, %v1793_v63  ;;  %v1884_v54 = vsel %vm1820_vm9, %v1788_v8, %v1852_v48  ;;  %vm1825_vm10 = vcmp.ge.f32.partialorder %v1793_v63, 0.0 }
 0x346   : > { %v1887_v43 = vsel %vm1823_vm7, %v1791_v56, %v1855_v2  ;;  %v3257_v53 = vpop.eup %3256  ;;  %3264 = vrcp.f32 %v1733_v42  ;;  %v1735_v40 = vadd.f32 1.0, %v3255_v52  ;;  %v1906_v34 = vpack.c.bf16 %v1886_v4, %v1884_v54 }
 0x347   : > { %v1907_v13 = vpack.c.bf16 %v1887_v43, %v1885_v0  ;;  %v3259_v59 = vpop.eup %3258  ;;  %3266 = vrcp.f32 %v1734_v3  ;;  %v1794_v22 = vmul.f32 %v3257_v53, %v4072_v10  ;;  %v1889_v10 = vsel %vm1825_vm10, %v1793_v63, %v1857_v9 }
 0x348   : > { %3268 = vrcp.f32 %v1735_v40  ;;  %v3261_v29 = vpop.eup %3260  ;;  %v1792_v31 = vmul.f32 %v3259_v59, %v4055_v49  ;;  %v2307_v43 = vunpack.c.l.bf16 %v3769_v50  ;;  %v2309_v63 = vunpack.c.l.bf16 %v3773_v47 }
 0x349   : > { %2836 = vmatprep.mubr.msk.bf16.mxu0 %vm2038_vm4, %v1907_v13  ;;  %v1795_v7 = vmul.f32 %v3261_v29, %v4075_v58  ;;  %v1858_v18 = vmul.f32 0.2, %v1794_v22  ;;  %vm1826_vm12 = vcmp.ge.f32.partialorder %v1794_v22, 0.0  ;;  %v2308_v40 = vunpack.c.h.bf16 %v3769_v50 }
 0x34a   : > { %v1856_v20 = vmul.f32 0.2, %v1792_v31  ;;  %vm1824_vm13 = vcmp.ge.f32.partialorder %v1792_v31, 0.0  ;;  %v2311_v50 = vunpack.c.l.bf16 %v3777_v5 }
 0x34b   : > { %vm1827_vm11 = vcmp.ge.f32.partialorder %v1795_v7, 0.0  ;;  %v1859_v17 = vmul.f32 0.2, %v1795_v7  ;;  %v1890_v33 = vsel %vm1826_vm12, %v1794_v22, %v1858_v18 }
 0x34c   : > { %v1888_v49 = vsel %vm1824_vm13, %v1792_v31, %v1856_v20  ;;  %v2310_v31 = vunpack.c.h.bf16 %v3773_v47 }
 0x34d   : > { %2094 = vmatmul.mubr.bf16.gmra.mxu0 %v1906_v34  ;;  %v1891_v26 = vsel %vm1827_vm11, %v1795_v7, %v1859_v17  ;;  %v1908_v45 = vpack.c.bf16 %v1890_v33, %v1888_v49  ;;  %v2313_v33 = vunpack.c.l.bf16 %v3781_v15  ;;  %v2312_v49 = vunpack.c.h.bf16 %v3777_v5 }
 0x34e   : > { %v1909_v21 = vpack.c.bf16 %v1891_v26, %v1889_v10 }
 0x350   : > { %v3263_v11 = vpop.eup %3262  ;;  %2837 = vmatprep.mubr.msk.bf16.mxu0 %vm2038_vm4, %v1909_v21 }
 0x351   : > { %v1796_v58 = vmul.f32 %v3263_v11, %v4077_v6 }
 0x353   : > { %v3265_v25 = vpop.eup %3264  ;;  %v1860_v8 = vmul.f32 0.2, %v1796_v58  ;;  %vm1828_vm0 = vcmp.ge.f32.partialorder %v1796_v58, 0.0 }
 0x354   : > { %v3267_v16 = vpop.eup %3266  ;;  %v1797_v51 = vmul.f32 %v3265_v25, %v4096_v23 }
 0x355   : > { %v3269_v19 = vpop.eup %3268  ;;  %v1798_v60 = vmul.f32 %v3267_v16, %v4114_v24  ;;  %2104 = vmatmul.mubr.bf16.gmra.mxu0 %v1908_v45  ;;  %v1892_v27 = vsel %vm1828_vm0, %v1796_v58, %v1860_v8 }
 0x356   : > { %v1861_v32 = vmul.f32 0.2, %v1797_v51  ;;  %v1799_v35 = vmul.f32 %v3269_v19, %v4116_v46  ;;  %vm1829_vm14 = vcmp.ge.f32.partialorder %v1797_v51, 0.0 }
 0x357   : > { %vm1830_vm15 = vcmp.ge.f32.partialorder %v1798_v60, 0.0  ;;  %v1862_v61 = vmul.f32 0.2, %v1798_v60 }
 0x358   : > { %vm1831_vm1 = vcmp.ge.f32.partialorder %v1799_v35, 0.0  ;;  %v1863_v41 = vmul.f32 0.2, %v1799_v35  ;;  %v1893_v6 = vsel %vm1829_vm14, %v1797_v51, %v1861_v32  ;;  %v2314_v51 = vunpack.c.h.bf16 %v3781_v15 }
 0x359   : > { %v1894_v55 = vsel %vm1830_vm15, %v1798_v60, %v1862_v61 }
 0x35a   : > { %v1895_v56 = vsel %vm1831_vm1, %v1799_v35, %v1863_v41  ;;  %v1910_v23 = vpack.c.bf16 %v1894_v55, %v1892_v27  ;;  %v2317_v27 = vunpack.c.l.bf16 %v3789_v28 }
 0x35b   : > { %v1911_v62 = vpack.c.bf16 %v1895_v56, %v1893_v6  ;;  %v2315_v56 = vunpack.c.l.bf16 %v3785_v14 }
 0x35d   : > { %2838 = vmatprep.mubr.msk.bf16.mxu0 %vm2038_vm4, %v1911_v62  ;;  %vm2499_vm4 = vcmask 523264  }
 0x35e   : > { %2114 = vmatmul.mubr.bf16.gmra.mxu0 %v1910_v23  ;;  %v2316_v23 = vunpack.c.h.bf16 %v3785_v14 }
 0x35f   : > { %2556 = vmatprep.mubr.bf16.mxu0 %v3278_v1 }
 0x3e2   : > { %v2260_v24 = vpop.f32.mrf.mxu1 }
 0x3e4   : > { %v2262_v46 = vpop.f32.mrf.mxu1 }
 0x3e6   : > { %v2264_v30 = vpop.f32.mrf.mxu1 }
 0x3e8   : > { %v2266_v37 = vpop.f32.mrf.mxu1 }
 0x3ee   : > { %v2270_v57 = vpop.f32.mrf.mxu1 }
 0x3f0   : > { %v2272_v39 = vpop.f32.mrf.mxu1 }
 0x3f2   : > { %v2274_v2 = vpop.f32.mrf.mxu1 }
 0x3f4   : > { %v2276_v12 = vpop.f32.mrf.mxu1 }
 0x3f6   : > { %v2280_v42 = vpop.f32.mrf.mxu1 }
 0x3f8   : > { %v2282_v59 = vpop.f32.mrf.mxu1 }
 0x3fa   : > { %v2284_v17 = vpop.f32.mrf.mxu1 }
 0x3fc   : > { %v2286_v25 = vpop.f32.mrf.mxu1 }
 0x3fe   : > { %v2290_v61 = vpop.f32.mrf.mxu1 }
 0x405   : > { %v2085_v48 = vpop.f32.mrf.mxu0 }
 0x406   : > { %v2261_v52 = vadd.f32 %v2260_v24, %v2085_v48 }
 0x407   : > { %v2087_v44 = vpop.f32.mrf.mxu0 }
 0x408   : > { %v2263_v3 = vadd.f32 %v2262_v46, %v2087_v44  ;;  %v2323_v22 = vadd.f32 %v2307_v43, %v2261_v52  ;;  %v2292_v46 = vpop.f32.mrf.mxu1 }
 0x409   : > { %v2089_v0 = vpop.f32.mrf.mxu0 }
 0x40a   : > { %v2265_v53 = vadd.f32 %v2264_v30, %v2089_v0  ;;  %v2324_v7 = vadd.f32 %v2308_v40, %v2263_v3  ;;  %v2294_v44 = vpop.f32.mrf.mxu1  ;;  %v2319_v3 = vunpack.c.l.bf16 %v3794_v36 }
 0x40b   : > { %v2091_v13 = vpop.f32.mrf.mxu0 }
 0x40c   : > { %v2325_v4 = vadd.f32 %v2309_v63, %v2265_v53  ;;  %v2267_v29 = vadd.f32 %v2266_v37, %v2091_v13  ;;  %v2321_v63 = vunpack.c.l.bf16 %v3797_v38  ;;  %v2296_v40 = vpop.f32.mrf.mxu1  ;;  %v2320_v13 = vunpack.c.h.bf16 %v3794_v36  ;;  %v3070_v36 = vld [vmem:[%s4302_s9] sm:$0xff]  }
 0x40d   : > { %v2095_v9 = vpop.f32.mrf.mxu0 }
 0x40e   : > { %v4161_v54 = vpack.c.bf16 %v2325_v4, %v2323_v22  ;;  %v2326_v34 = vadd.f32 %v2310_v31, %v2267_v29  ;;  %v2271_v20 = vadd.f32 %v2270_v57, %v2095_v9  ;;  %v2318_v57 = vunpack.c.h.bf16 %v3789_v28 }
 0x40f   : > { %v2097_v18 = vpop.f32.mrf.mxu0  ;;  %v2322_v29 = vunpack.c.h.bf16 %v3797_v38  ;;  %v3071_v38 = vld [vmem:[%s4302_s9 + $0x30] sm:$0xff]  }
 0x410   : > { %v4163_v10 = vpack.c.bf16 %v2326_v34, %v2324_v7  ;;  %v2273_v21 = vadd.f32 %v2272_v39, %v2097_v18  ;;  %v2327_v58 = vadd.f32 %v2311_v50, %v2271_v20  ;;  %v3072_v18 = vld [vmem:[%s4302_s9 + $0x8] sm:$0xff]   ;;  %v3075_v20 = vld [vmem:[%s4302_s9 + $0x18] sm:$0xff]   ;;  %v2382_v50 = vpop.permute.xlu0 %2381 }
 0x411   : > { %v2099_v26 = vpop.f32.mrf.mxu0 }
 0x412   : > { %v2275_v11 = vadd.f32 %v2274_v2, %v2099_v26  ;;  %v2328_v60 = vadd.f32 %v2312_v49, %v2273_v21  ;;  %v3077_v26 = vld [vmem:[%s4302_s9 + $0x28] sm:$0xff]   ;;  %v2387_v21 = vpop.permute.xlu1 %2386 }
 0x413   : > { %v2101_v47 = vpop.f32.mrf.mxu0 }
 0x414   : > { %v2329_v45 = vadd.f32 %v2313_v33, %v2275_v11  ;;  %v2277_v16 = vadd.f32 %v2276_v12, %v2101_v47  ;;  %v2392_v11 = vpop.permute.xlu0 %2391 }
 0x415   : > { %v2105_v19 = vpop.f32.mrf.mxu0 }
 0x416   : > { %v2341_v32 = vpack.c.bf16 %v2329_v45, %v2327_v58  ;;  %v2330_v35 = vadd.f32 %v2314_v51, %v2277_v16  ;;  %v2281_v41 = vadd.f32 %v2280_v42, %v2105_v19  ;;  %v2397_v33 = vpop.permute.xlu1 %2396 }
 0x417   : > { %v2107_v8 = vpop.f32.mrf.mxu0 }
 0x418   : > { %v2342_v55 = vpack.c.bf16 %v2330_v35, %v2328_v60  ;;  %v2283_v62 = vadd.f32 %v2282_v59, %v2107_v8  ;;  %v2331_v15 = vadd.f32 %v2315_v56, %v2281_v41  ;;  %v4219_v49 = vpop.permute.xlu0 %2401 }
 0x419   : > { %v2109_v6 = vpop.f32.mrf.mxu0 }
 0x41a   : > { %v2285_v5 = vadd.f32 %v2284_v17, %v2109_v6  ;;  %v2332_v39 = vadd.f32 %v2316_v23, %v2283_v62  ;;  %v3073_v17 = vld [vmem:[%s4302_s9 + $0x38] sm:$0xff]   ;;  %v4221_v47 = vpop.permute.xlu1 %2406 }
 0x41b   : > { %v2111_v24 = vpop.f32.mrf.mxu0 }
 0x41c   : > { %v2333_v30 = vadd.f32 %v2317_v27, %v2285_v5  ;;  %v2287_v37 = vadd.f32 %v2286_v25, %v2111_v24  ;;  %v4223_v25 = vpop.permute.xlu0 %2411 }
 0x41e   : > { %v2343_v2 = vpack.c.bf16 %v2333_v30, %v2331_v15  ;;  %v2334_v12 = vadd.f32 %v2318_v57, %v2287_v37  ;;  %v2115_v48 = vpop.f32.mrf.mxu0  ;;  %v4225_v58 = vpop.permute.xlu1 %2416 }
 0x41f   : > { %v2291_v0 = vadd.f32 %v2290_v61, %v2115_v48 }
 0x420   : > { %v2117_v42 = vpop.f32.mrf.mxu0  ;;  %v2344_v52 = vpack.c.bf16 %v2334_v12, %v2332_v39 }
 0x421   : > { %v2293_v53 = vadd.f32 %v2292_v46, %v2117_v42  ;;  %v2335_v28 = vadd.f32 %v2319_v3, %v2291_v0 }
 0x422   : > { %v2119_v43 = vpop.f32.mrf.mxu0  ;;  %v4229_v45 = vpop.permute.xlu1 %2426 }
 0x423   : > { %v2295_v14 = vadd.f32 %v2294_v44, %v2119_v43  ;;  %v2336_v31 = vadd.f32 %v2320_v13, %v2293_v53 }
 0x424   : > { %v2121_v59 = vpop.f32.mrf.mxu0 }
 0x425   : > { %v2337_v22 = vadd.f32 %v2321_v63, %v2295_v14  ;;  %v2297_v4 = vadd.f32 %v2296_v40, %v2121_v59 }
 0x426   : > { %v4233_v51 = vpop.permute.xlu1 %2436 }
 0x427   : > { %v2345_v9 = vpack.c.bf16 %v2337_v22, %v2335_v28  ;;  %v2338_v7 = vadd.f32 %v2322_v29, %v2297_v4 }
 0x429   : > { %v2346_v34 = vpack.c.bf16 %v2338_v7, %v2336_v31 }
 0x42b   : > { %2532 = vmatprep.subr.bf16.mxu0 %v2346_v34  ;;  %2889 = vmatprep.subr.bf16.mxu1 %v2346_v34 }
 0x42c   : > { %2533 = vmatpush1.bf16.msra.mxu0 %v2345_v9  ;;  %2893 = vmatpush1.bf16.msra.mxu1 %v2345_v9 }
 0x42d   : > { %2534 = vmatprep.subr.bf16.mxu0 %v2344_v52  ;;  %2890 = vmatprep.subr.bf16.mxu1 %v2344_v52 }
 0x430   : > { %2535 = vmatpush1.bf16.msra.mxu0 %v2343_v2  ;;  %2894 = vmatpush1.bf16.msra.mxu1 %v2343_v2 }
 0x431   : > { %2536 = vmatprep.subr.bf16.mxu0 %v2342_v55  ;;  %2891 = vmatprep.subr.bf16.mxu1 %v2342_v55  ;;  %v2447_v55 = vpop.permute.xlu1 %2446 }
 0x434   : > { %2537 = vmatpush1.bf16.msra.mxu0 %v2341_v32  ;;  %2895 = vmatpush1.bf16.msra.mxu1 %v2341_v32 }
 0x435   : > { %2538 = vmatprep.subr.bf16.mxu0 %v4163_v10  ;;  %2892 = vmatprep.subr.bf16.mxu1 %v4163_v10  ;;  %v3076_v10 = vld [vmem:[%s4302_s9 + $0x20] sm:$0xff]   ;;  %v2457_v42 = vpop.permute.xlu1 %2456 }
 0x438   : > { %2539 = vmatpush1.bf16.msra.mxu0 %v4161_v54  ;;  %2896 = vmatpush1.bf16.msra.mxu1 %v4161_v54  ;;  %v3074_v54 = vld [vmem:[%s4302_s9 + $0x10] sm:$0xff]  }
 0x43b   : > { %2869 = vmatmul.mubr.msk.bf16.vlgmr.msra.gmra.mxu0 %vm2499_vm4, %v3070_v36  ;;  %2875 = vmatmul.mubr.msk.bf16.vlgmr.msra.gmra.mxu1 %vm2499_vm4, %v3071_v38 }
 0x43c   : > { %2566 = vmatprep.mubr.bf16.mxu0 %v3278_v1  ;;  %2626 = vmatprep.mubr.bf16.mxu1 %v3278_v1 }
 0x443   : > { %2870 = vmatmul.mubr.msk.bf16.gmra.mxu0 %vm2499_vm4, %v3072_v18  ;;  %2876 = vmatmul.mubr.msk.bf16.gmra.mxu1 %vm2499_vm4, %v3073_v17 }
 0x444   : > { %2576 = vmatprep.mubr.bf16.mxu0 %v3278_v1 }
 0x44b   : > { %2871 = vmatmul.mubr.msk.bf16.gmra.mxu0 %vm2499_vm4, %v3074_v54 }
 0x44c   : > { %2586 = vmatprep.mubr.bf16.mxu0 %v3278_v1 }
 0x453   : > { %2872 = vmatmul.mubr.msk.bf16.gmra.mxu0 %vm2499_vm4, %v3075_v20 }
 0x454   : > { %2596 = vmatprep.mubr.bf16.mxu0 %v3278_v1 }
 0x45b   : > { %2873 = vmatmul.mubr.msk.bf16.gmra.mxu0 %vm2499_vm4, %v3076_v10 }
 0x45c   : > { %2606 = vmatprep.mubr.bf16.mxu0 %v3278_v1  ;;  %v4227_v1 = vpop.permute.xlu0 %2421 }
 0x460   : > { %v4231_v16 = vpop.permute.xlu0 %2431 }
 0x463   : > { %2874 = vmatmul.mubr.msk.bf16.gmra.mxu0 %vm2499_vm4, %v3077_v26 }
 0x464   : > { %v2442_v19 = vpop.permute.xlu0 %2441 }
 0x468   : > { %v2452_v15 = vpop.permute.xlu0 %2451 }
 0x4fb   : > { %v2558_v60 = vpop.f32.mrf.mxu0  ;;  %v2618_v32 = vpop.f32.mrf.mxu1 }
 0x4fc   : > { %v2559_v35 = vadd.f32 %v2558_v60, %v2382_v50  ;;  %v2619_v8 = vadd.f32 %v2618_v32, %v2442_v19 }
 0x4fd   : > { %v2560_v61 = vpop.f32.mrf.mxu0  ;;  %v2620_v41 = vpop.f32.mrf.mxu1 }
 0x4fe   : > { %2637 = vst [vmem:[%s4240_s26] sm:$0xff] %v2559_v35  ;;  %2661 = vst [vmem:[%s4240_s26 + $0xc0] sm:$0xff] %v2619_v8  ;;  %v2561_v6 = vadd.f32 %v2560_v61, %v2382_v50  ;;  %v2621_v56 = vadd.f32 %v2620_v41, %v2442_v19 }
 0x4ff   : > { %v2562_v62 = vpop.f32.mrf.mxu0  ;;  %v2622_v5 = vpop.f32.mrf.mxu1 }
 0x500   : > { %2638 = vst [vmem:[%s4240_s26 + $0x8] sm:$0xff] %v2561_v6  ;;  %2662 = vst [vmem:[%s4240_s26 + $0xc8] sm:$0xff] %v2621_v56  ;;  %v2563_v27 = vadd.f32 %v2562_v62, %v2387_v21  ;;  %v2623_v23 = vadd.f32 %v2622_v5, %v2447_v55 }
 0x501   : > { %v2564_v24 = vpop.f32.mrf.mxu0  ;;  %v2624_v46 = vpop.f32.mrf.mxu1 }
 0x502   : > { %2639 = vst [vmem:[%s4240_s26 + $0x10] sm:$0xff] %v2563_v27  ;;  %2663 = vst [vmem:[%s4240_s26 + $0xd0] sm:$0xff] %v2623_v23  ;;  %v2565_v30 = vadd.f32 %v2564_v24, %v2387_v21  ;;  %v2625_v37 = vadd.f32 %v2624_v46, %v2447_v55 }
 0x503   : > { %v2568_v57 = vpop.f32.mrf.mxu0  ;;  %v2628_v39 = vpop.f32.mrf.mxu1 }
 0x504   : > { %2640 = vst [vmem:[%s4240_s26 + $0x18] sm:$0xff] %v2565_v30  ;;  %2664 = vst [vmem:[%s4240_s26 + $0xd8] sm:$0xff] %v2625_v37  ;;  %v2569_v2 = vadd.f32 %v2568_v57, %v2392_v11  ;;  %v2629_v12 = vadd.f32 %v2628_v39, %v2452_v15 }
 0x505   : > { %v2570_v48 = vpop.f32.mrf.mxu0  ;;  %v2630_v44 = vpop.f32.mrf.mxu1 }
 0x506   : > { %2641 = vst [vmem:[%s4240_s26 + $0x20] sm:$0xff] %v2569_v2  ;;  %2665 = vst [vmem:[%s4240_s26 + $0xe0] sm:$0xff] %v2629_v12  ;;  %v2571_v52 = vadd.f32 %v2570_v48, %v2392_v11  ;;  %v2631_v0 = vadd.f32 %v2630_v44, %v2452_v15 }
 0x507   : > { %v2572_v43 = vpop.f32.mrf.mxu0  ;;  %v2632_v3 = vpop.f32.mrf.mxu1 }
 0x508   : > { %2642 = vst [vmem:[%s4240_s26 + $0x28] sm:$0xff] %v2571_v52  ;;  %2666 = vst [vmem:[%s4240_s26 + $0xe8] sm:$0xff] %v2631_v0  ;;  %v2573_v53 = vadd.f32 %v2572_v43, %v2397_v33  ;;  %v2633_v14 = vadd.f32 %v2632_v3, %v2457_v42 }
 0x509   : > { %v2574_v63 = vpop.f32.mrf.mxu0  ;;  %v2634_v40 = vpop.f32.mrf.mxu1 }
 0x50a   : > { %2643 = vst [vmem:[%s4240_s26 + $0x30] sm:$0xff] %v2573_v53  ;;  %2667 = vst [vmem:[%s4240_s26 + $0xf0] sm:$0xff] %v2633_v14  ;;  %v2575_v13 = vadd.f32 %v2574_v63, %v2397_v33  ;;  %v2635_v59 = vadd.f32 %v2634_v40, %v2457_v42 }
 0x50b   : > { %v2578_v28 = vpop.f32.mrf.mxu0 }
 0x50c   : > { %2644 = vst [vmem:[%s4240_s26 + $0x38] sm:$0xff] %v2575_v13  ;;  %2668 = vst [vmem:[%s4240_s26 + $0xf8] sm:$0xff] %v2635_v59  ;;  %v2579_v22 = vadd.f32 %v2578_v28, %v4219_v49 }
 0x50d   : > { %v2580_v4 = vpop.f32.mrf.mxu0 }
 0x50e   : > { %2645 = vst [vmem:[%s4240_s26 + $0x40] sm:$0xff] %v2579_v22  ;;  %v2581_v29 = vadd.f32 %v2580_v4, %v4219_v49 }
 0x50f   : > { %v2582_v31 = vpop.f32.mrf.mxu0 }
 0x510   : > { %2646 = vst [vmem:[%s4240_s26 + $0x48] sm:$0xff] %v2581_v29  ;;  %v2583_v9 = vadd.f32 %v2582_v31, %v4221_v47 }
 0x511   : > { %v2584_v7 = vpop.f32.mrf.mxu0 }
 0x512   : > { %2647 = vst [vmem:[%s4240_s26 + $0x50] sm:$0xff] %v2583_v9  ;;  %v2585_v34 = vadd.f32 %v2584_v7, %v4221_v47 }
 0x513   : > { %v2588_v36 = vpop.f32.mrf.mxu0 }
 0x514   : > { %2648 = vst [vmem:[%s4240_s26 + $0x58] sm:$0xff] %v2585_v34  ;;  %v2589_v38 = vadd.f32 %v2588_v36, %v4223_v25 }
 0x515   : > { %v2590_v18 = vpop.f32.mrf.mxu0 }
 0x516   : > { %2649 = vst [vmem:[%s4240_s26 + $0x60] sm:$0xff] %v2589_v38  ;;  %v2591_v17 = vadd.f32 %v2590_v18, %v4223_v25 }
 0x517   : > { %v2592_v54 = vpop.f32.mrf.mxu0 }
 0x518   : > { %2650 = vst [vmem:[%s4240_s26 + $0x68] sm:$0xff] %v2591_v17  ;;  %v2593_v20 = vadd.f32 %v2592_v54, %v4225_v58 }
 0x519   : > { %v2594_v10 = vpop.f32.mrf.mxu0 }
 0x51a   : > { %2651 = vst [vmem:[%s4240_s26 + $0x70] sm:$0xff] %v2593_v20  ;;  %v2595_v26 = vadd.f32 %v2594_v10, %v4225_v58 }
 0x51b   : > { %v2598_v50 = vpop.f32.mrf.mxu0 }
 0x51c   : > { %2652 = vst [vmem:[%s4240_s26 + $0x78] sm:$0xff] %v2595_v26  ;;  %v2599_v21 = vadd.f32 %v2598_v50, %v4227_v1 }
 0x51d   : > { %v2600_v11 = vpop.f32.mrf.mxu0 }
 0x51e   : > { %2653 = vst [vmem:[%s4240_s26 + $0x80] sm:$0xff] %v2599_v21  ;;  %v2601_v33 = vadd.f32 %v2600_v11, %v4227_v1 }
 0x51f   : > { %v2602_v49 = vpop.f32.mrf.mxu0 }
 0x520   : > { %2654 = vst [vmem:[%s4240_s26 + $0x88] sm:$0xff] %v2601_v33  ;;  %v2603_v47 = vadd.f32 %v2602_v49, %v4229_v45 }
 0x521   : > { %v2604_v25 = vpop.f32.mrf.mxu0 }
 0x522   : > { %2655 = vst [vmem:[%s4240_s26 + $0x90] sm:$0xff] %v2603_v47  ;;  %v2605_v58 = vadd.f32 %v2604_v25, %v4229_v45 }
 0x523   : > { %v2608_v19 = vpop.f32.mrf.mxu0 }
 0x524   : > { %2656 = vst [vmem:[%s4240_s26 + $0x98] sm:$0xff] %v2605_v58  ;;  %v2609_v60 = vadd.f32 %v2608_v19, %v4231_v16 }
 0x525   : > { %v2610_v32 = vpop.f32.mrf.mxu0 }
 0x526   : > { %2657 = vst [vmem:[%s4240_s26 + $0xa0] sm:$0xff] %v2609_v60  ;;  %v2611_v35 = vadd.f32 %v2610_v32, %v4231_v16 }
 0x527   : > { %v2612_v8 = vpop.f32.mrf.mxu0 }
 0x528   : > { %2658 = vst [vmem:[%s4240_s26 + $0xa8] sm:$0xff] %v2611_v35  ;;  %v2613_v1 = vadd.f32 %v2612_v8, %v4233_v51 }
 0x529   : > { %v2614_v61 = vpop.f32.mrf.mxu0 }
 0x52a   : > { %2659 = vst [vmem:[%s4240_s26 + $0xb0] sm:$0xff] %v2613_v1  ;;  %v2615_v41 = vadd.f32 %v2614_v61, %v4233_v51 }
 0x52c   : > { %2660 = vst [vmem:[%s4240_s26 + $0xb8] sm:$0xff] %v2615_v41 }
 0x52d PF: > { %s21_s17 = sadd.s32 1, %s3276_s17  }
 0x52e   : > { %p18_p4 = scmp.ge.s32.totalorder %s21_s17, 4  }
 0x530   :  { %20 = sbr.rel (!%p18_p4) target bundleno = 1 (0x1), region = 94 }

</bundles_post_ra>
